<compile_context>
chip_gen: v5e
topology: v5e:2x2
jax: 0.10.0
libtpu: 0.0.40
codegen_flags: <defaults>
</compile_context>

<pallas_src>
import jax
import jax.numpy as jnp
from jax.experimental import pallas as pl
from jax.experimental.pallas import tpu as pltpu


class Config:
    LSTM_layers = 2
    drop_prob = 0.5  # eval mode -> identity


def sentiment_kernel(x0_ref, lens_ref,
                     wih0_ref, whh0_ref, b0_ref,
                     wih1_ref, whh1_ref, b1_ref,
                     w1_ref, bfc1_ref, w2_ref, bfc2_ref, w3_ref, bfc3_ref,
                     last_ref, hn_ref, cn_ref,
                     gx0_buf):
    H = whh0_ref.shape[0]
    B = hn_ref.shape[1]
    S = x0_ref.shape[0] // B

    # ---- layer 0: hoisted input matmul + bias (one batched MXU op), staged to
    # VMEM scratch so the recurrence reads one (B,4H) slab per step instead of
    # keeping an (S*B,4H) value live across the whole unrolled loop.
    gx0_buf[...] = (jnp.dot(x0_ref[...], wih0_ref[...],
                            preferred_element_type=jnp.float32) + b0_ref[...])

    # Small weights / bias / lengths held resident in vregs across the loop.
    whh0 = whh0_ref[...]
    wih1 = wih1_ref[...]
    whh1 = whh1_ref[...]
    b1 = b1_ref[...]
    lens = lens_ref[...]                      # (B,1) int32

    def lstm_cell(gates, c):
        # One sigmoid + one tanh over the full (B,4H) vreg (2 EUP pushes).
        # For H >= 64, reorder gate columns to (i,f,o,g) in the wrapper and
        # split sigmoid[:, :3H] / tanh[:, 3H:] to halve EUP work.
        sig = jax.nn.sigmoid(gates)
        tnh = jnp.tanh(gates)
        i_g = sig[:, 0:H]
        f_g = sig[:, H:2 * H]
        g_g = tnh[:, 2 * H:3 * H]
        o_g = sig[:, 3 * H:4 * H]
        c_new = f_g * c + i_g * g_g
        h_new = o_g * jnp.tanh(c_new)
        return h_new, c_new

    zeros = jnp.zeros((B, H), jnp.float32)
    h0, c0 = zeros, zeros                     # layer-0 state
    h1, c1 = zeros, zeros                     # layer-1 state
    h0_prev = zeros                           # layer-0 output at step t-1
    m_prev = lens > 0                         # overwritten at t=0 before first use

    # Wavefront: inside iteration t, layer-0 step t and layer-1 step t-1 are two
    # independent serial chains, so their recurrent matmuls / EUP pushes overlap.
    # (S is small -> fully unrolled; use lax.fori_loop for long sequences.)
    for t in range(S + 1):
        if t < S:
            gates0 = gx0_buf[pl.ds(t * B, B), :] + jnp.dot(
                h0.astype(jnp.bfloat16), whh0,
                preferred_element_type=jnp.float32)
            h0_new, c0_new = lstm_cell(gates0, c0)
            m = lens > t                      # (B,1) bool: t < len[b]
        if t >= 1:
            # Layer-1 step t-1 consumes the layer-0 output from the previous
            # iteration; its input matmul is per-step but off layer-0's chain.
            gates1 = (jnp.dot(h0_prev.astype(jnp.bfloat16), wih1,
                              preferred_element_type=jnp.float32)
                      + jnp.dot(h1.astype(jnp.bfloat16), whh1,
                                preferred_element_type=jnp.float32)
                      + b1)
            h1_new, c1_new = lstm_cell(gates1, c1)
            h1 = jnp.where(m_prev, h1_new, h1)   # packed LSTM: freeze ended rows
            c1 = jnp.where(m_prev, c1_new, c1)
        if t < S:
            h0 = jnp.where(m, h0_new, h0)
            c0 = jnp.where(m, c0_new, c0)
            h0_prev = h0
            m_prev = m

    hn_ref[0] = h0
    cn_ref[0] = c0
    hn_ref[1] = h1
    cn_ref[1] = c1

    # ---- FC head on the last valid top-layer output (== top-layer h_n) ----
    # TODO(synk): nn.Dropout is stochastic in training; implemented as identity (eval).
    z = jnp.tanh(jnp.dot(h1.astype(jnp.bfloat16), w1_ref[...],
                         preferred_element_type=jnp.float32) + bfc1_ref[...])
    z = jnp.tanh(jnp.dot(z.astype(jnp.bfloat16), w2_ref[...],
                         preferred_element_type=jnp.float32) + bfc2_ref[...])
    last_ref[...] = (jnp.dot(z.astype(jnp.bfloat16), w3_ref[...],
                             preferred_element_type=jnp.float32) + bfc3_ref[...])


def init_params(key, vocab_size, embedding_dim, hidden_dim):
    E, H = embedding_dim, hidden_dim
    ks = jax.random.split(key, 16)
    p = {}
    p["embedding"] = jax.random.normal(ks[0], (vocab_size, E), jnp.float32) * 0.1
    # LSTM layer 0 (input dim E), layer 1 (input dim H) -- PyTorch shapes,
    # transposed for x @ W, biases combined (b_ih + b_hh). Gate order i,f,g,o.
    p["wih0"] = (jax.random.normal(ks[1], (4 * H, E), jnp.float32) * 0.1).T
    p["whh0"] = (jax.random.normal(ks[2], (4 * H, H), jnp.float32) * 0.1).T
    p["b0"] = (jax.random.normal(ks[3], (4 * H,), jnp.float32) * 0.1
               + jax.random.normal(ks[4], (4 * H,), jnp.float32) * 0.1).reshape(1, 4 * H)
    p["wih1"] = (jax.random.normal(ks[5], (4 * H, H), jnp.float32) * 0.1).T
    p["whh1"] = (jax.random.normal(ks[6], (4 * H, H), jnp.float32) * 0.1).T
    p["b1"] = (jax.random.normal(ks[7], (4 * H,), jnp.float32) * 0.1
               + jax.random.normal(ks[8], (4 * H,), jnp.float32) * 0.1).reshape(1, 4 * H)
    # FC head
    p["w1"] = (jax.random.normal(ks[9], (256, H), jnp.float32) * 0.1).T
    p["bfc1"] = (jax.random.normal(ks[10], (256,), jnp.float32) * 0.1).reshape(1, 256)
    p["w2"] = (jax.random.normal(ks[11], (32, 256), jnp.float32) * 0.1).T
    p["bfc2"] = (jax.random.normal(ks[12], (32,), jnp.float32) * 0.1).reshape(1, 32)
    p["w3"] = (jax.random.normal(ks[13], (2, 32), jnp.float32) * 0.1).T
    p["bfc3"] = (jax.random.normal(ks[14], (2,), jnp.float32) * 0.1).reshape(1, 2)
    return p


def sentiment_forward(params, input_ids, batch_seq_len):
    """Returns (last_outputs (B,2), (h_n (L,B,H), c_n (L,B,H)))."""
    B, S = input_ids.shape
    H = params["whh0"].shape[0]
    L = Config.LSTM_layers

    # Pad batch to a multiple of 8 sublanes so vreg / MXU rows are full.
    B_pad = ((B + 7) // 8) * 8
    pad = B_pad - B
    ids = jnp.pad(input_ids, ((0, pad), (0, 0)))
    lens = jnp.pad(batch_seq_len, ((0, pad),))   # pad rows: length 0 -> frozen at 0

    # Embedding gather (plain JAX glue) directly in time-major order:
    # (S, B_pad, E) with no separate transpose, then flatten rows (t*B_pad + b).
    embeds_tm = jnp.take(params["embedding"], ids.T, axis=0)      # (S, B_pad, E)
    x0 = embeds_tm.reshape(S * B_pad, -1).astype(jnp.bfloat16)    # bf16 MXU operand
    lens_col = lens.astype(jnp.int32).reshape(B_pad, 1)

    bf16 = lambda a: a.astype(jnp.bfloat16)
    vm = pl.BlockSpec(memory_space=pltpu.MemorySpace.VMEM)
    inputs = [x0, lens_col,
              bf16(params["wih0"]), bf16(params["whh0"]), params["b0"],
              bf16(params["wih1"]), bf16(params["whh1"]), params["b1"],
              bf16(params["w1"]), params["bfc1"],
              bf16(params["w2"]), params["bfc2"],
              bf16(params["w3"]), params["bfc3"]]

    last, hn, cn = pl.pallas_call(
        sentiment_kernel,
        out_shape=(jax.ShapeDtypeStruct((B_pad, 2), jnp.float32),
                   jax.ShapeDtypeStruct((L, B_pad, H), jnp.float32),
                   jax.ShapeDtypeStruct((L, B_pad, H), jnp.float32)),
        in_specs=[vm] * len(inputs),
        out_specs=(vm, vm, vm),
        scratch_shapes=[pltpu.VMEM((S * B_pad, 4 * H), jnp.float32)],
    )(*inputs)
    return last[:B], (hn[:, :B, :], cn[:, :B, :])


if __name__ == "__main__":
    # Small shapes consistent with the module's forward.
    B, S = 2, 8
    vocab_size, embedding_dim, hidden_dim = 50, 32, 32

    key = jax.random.PRNGKey(0)
    k_params, k_ids = jax.random.split(key)
    params = init_params(k_params, vocab_size, embedding_dim, hidden_dim)

    input_ids = jax.random.randint(k_ids, (B, S), 0, vocab_size, dtype=jnp.int32)
    batch_seq_len = jnp.array([8, 5], dtype=jnp.int32)  # sorted desc (pack_padded)

    last_outputs, (h_n, c_n) = sentiment_forward(params, input_ids, batch_seq_len)
    jax.block_until_ready((last_outputs, h_n, c_n))

    assert last_outputs.shape == (B, 2)
    assert h_n.shape == (Config.LSTM_layers, B, hidden_dim)
    assert c_n.shape == (Config.LSTM_layers, B, hidden_dim)
    print("KERNEL_OK")
</pallas_src>

<mosaic_0001>
module attributes {stable_mosaic.version = 11 : i64} {
  func.func @sentiment_kernel(%arg0: memref<64x32xbf16, #tpu.memory_space<vmem>>, %arg1: memref<8x1xi32, #tpu.memory_space<vmem>>, %arg2: memref<32x128xbf16, #tpu.memory_space<vmem>>, %arg3: memref<32x128xbf16, #tpu.memory_space<vmem>>, %arg4: memref<1x128xf32, #tpu.memory_space<vmem>>, %arg5: memref<32x128xbf16, #tpu.memory_space<vmem>>, %arg6: memref<32x128xbf16, #tpu.memory_space<vmem>>, %arg7: memref<1x128xf32, #tpu.memory_space<vmem>>, %arg8: memref<32x256xbf16, #tpu.memory_space<vmem>>, %arg9: memref<1x256xf32, #tpu.memory_space<vmem>>, %arg10: memref<256x32xbf16, #tpu.memory_space<vmem>>, %arg11: memref<1x32xf32, #tpu.memory_space<vmem>>, %arg12: memref<32x2xbf16, #tpu.memory_space<vmem>>, %arg13: memref<1x2xf32, #tpu.memory_space<vmem>>, %arg14: memref<8x2xf32, #tpu.memory_space<vmem>>, %arg15: memref<2x8x32xf32, #tpu.memory_space<vmem>>, %arg16: memref<2x8x32xf32, #tpu.memory_space<vmem>>, %arg17: memref<64x128xf32, #tpu.memory_space<vmem>>) attributes {dimension_semantics = [], scalar_prefetch = 0 : i64, scratch_operands = 1 : i64, tpu.core_type = #tpu.core_type<tc>} {
    %c0 = arith.constant 0 : index
    %c0_0 = arith.constant 0 : index
    %0 = vector.load %arg0[%c0, %c0_0] : memref<64x32xbf16, #tpu.memory_space<vmem>>, vector<64x32xbf16>
    %c0_1 = arith.constant 0 : index
    %c0_2 = arith.constant 0 : index
    %1 = vector.load %arg2[%c0_1, %c0_2] : memref<32x128xbf16, #tpu.memory_space<vmem>>, vector<32x128xbf16>
    %cst = arith.constant dense<0.000000e+00> : vector<64x128xf32>
    %2 = tpu.matmul %0, %1, %cst {dimension_numbers = #tpu.dot_dimension_numbers<[1], [0], [0], [1], [0, 0, 1, 1], [], []>} : vector<64x32xbf16>, vector<32x128xbf16>, vector<64x128xf32> -> vector<64x128xf32>
    %c0_3 = arith.constant 0 : index
    %c0_4 = arith.constant 0 : index
    %3 = vector.load %arg4[%c0_3, %c0_4] : memref<1x128xf32, #tpu.memory_space<vmem>>, vector<1x128xf32>
    %4 = vector.broadcast %3 : vector<1x128xf32> to vector<64x128xf32>
    %5 = arith.addf %2, %4 : vector<64x128xf32>
    %c0_5 = arith.constant 0 : index
    %c0_6 = arith.constant 0 : index
    %6 = vector.load %arg17[%c0_5, %c0_6] : memref<64x128xf32, #tpu.memory_space<vmem>>, vector<64x128xf32>
    tpu.vector_store %arg17[%c0_5, %c0_6], %5 {strides = array<i32>} : memref<64x128xf32, #tpu.memory_space<vmem>>, vector<64x128xf32>,
    %c0_7 = arith.constant 0 : index
    %c0_8 = arith.constant 0 : index
    %7 = vector.load %arg3[%c0_7, %c0_8] : memref<32x128xbf16, #tpu.memory_space<vmem>>, vector<32x128xbf16>
    %c0_9 = arith.constant 0 : index
    %c0_10 = arith.constant 0 : index
    %8 = vector.load %arg5[%c0_9, %c0_10] : memref<32x128xbf16, #tpu.memory_space<vmem>>, vector<32x128xbf16>
    %c0_11 = arith.constant 0 : index
    %c0_12 = arith.constant 0 : index
    %9 = vector.load %arg6[%c0_11, %c0_12] : memref<32x128xbf16, #tpu.memory_space<vmem>>, vector<32x128xbf16>
    %c0_13 = arith.constant 0 : index
    %c0_14 = arith.constant 0 : index
    %10 = vector.load %arg7[%c0_13, %c0_14] : memref<1x128xf32, #tpu.memory_space<vmem>>, vector<1x128xf32>
    %c0_15 = arith.constant 0 : index
    %c0_16 = arith.constant 0 : index
    %11 = vector.load %arg1[%c0_15, %c0_16] : memref<8x1xi32, #tpu.memory_space<vmem>>, vector<8x1xi32>
    %cst_17 = arith.constant 0.000000e+00 : f32
    %12 = vector.broadcast %cst_17 : f32 to vector<8x32xf32>
    %c0_18 = arith.constant 0 : index
    %c0_19 = arith.constant 0 : index
    %13 = vector.load %arg17[%c0_18, %c0_19] : memref<64x128xf32, #tpu.memory_space<vmem>>, vector<8x128xf32>
    %14 = arith.truncf %12 : vector<8x32xf32> to vector<8x32xbf16>
    %cst_20 = arith.constant dense<0.000000e+00> : vector<8x128xf32>
    %15 = tpu.matmul %14, %7, %cst_20 {dimension_numbers = #tpu.dot_dimension_numbers<[1], [0], [0], [1], [0, 0, 1, 1], [], []>} : vector<8x32xbf16>, vector<32x128xbf16>, vector<8x128xf32> -> vector<8x128xf32>
    %16 = arith.addf %13, %15 : vector<8x128xf32>
    %17 = arith.negf %16 : vector<8x128xf32>
    %18 = math.exp %17 : vector<8x128xf32>
    %cst_21 = arith.constant 1.000000e+00 : f32
    %19 = vector.broadcast %cst_21 : f32 to vector<8x128xf32>
    %20 = arith.addf %19, %18 : vector<8x128xf32>
    %21 = arith.divf %19, %20 : vector<8x128xf32>
    %22 = math.tanh %16 : vector<8x128xf32>
    %23 = vector.extract_strided_slice %21 {offsets = [0, 0], sizes = [8, 32], strides = [1, 1]} : vector<8x128xf32> to vector<8x32xf32>
    %24 = vector.extract_strided_slice %21 {offsets = [0, 32], sizes = [8, 32], strides = [1, 1]} : vector<8x128xf32> to vector<8x32xf32>
    %25 = vector.extract_strided_slice %22 {offsets = [0, 64], sizes = [8, 32], strides = [1, 1]} : vector<8x128xf32> to vector<8x32xf32>
    %26 = vector.extract_strided_slice %21 {offsets = [0, 96], sizes = [8, 32], strides = [1, 1]} : vector<8x128xf32> to vector<8x32xf32>
    %27 = arith.mulf %24, %12 : vector<8x32xf32>
    %28 = arith.mulf %23, %25 : vector<8x32xf32>
    %29 = arith.addf %27, %28 : vector<8x32xf32>
    %30 = math.tanh %29 : vector<8x32xf32>
    %31 = arith.mulf %26, %30 : vector<8x32xf32>
    %c0_i32 = arith.constant 0 : i32
    %32 = vector.broadcast %c0_i32 : i32 to vector<8x1xi32>
    %33 = arith.cmpi sgt, %11, %32 : vector<8x1xi32>
    %34 = vector.shape_cast %33 : vector<8x1xi1> to vector<8x1xi1>
    %35 = vector.broadcast %34 : vector<8x1xi1> to vector<8x32xi1>
    %36 = arith.select %35, %31, %12 : vector<8x32xi1>, vector<8x32xf32>
    %37 = vector.shape_cast %33 : vector<8x1xi1> to vector<8x1xi1>
    %38 = vector.broadcast %37 : vector<8x1xi1> to vector<8x32xi1>
    %39 = arith.select %38, %29, %12 : vector<8x32xi1>, vector<8x32xf32>
    %c8 = arith.constant 8 : index
    %c0_22 = arith.constant 0 : index
    %40 = vector.load %arg17[%c8, %c0_22] : memref<64x128xf32, #tpu.memory_space<vmem>>, vector<8x128xf32>
    %41 = arith.truncf %36 : vector<8x32xf32> to vector<8x32xbf16>
    %cst_23 = arith.constant dense<0.000000e+00> : vector<8x128xf32>
    %42 = tpu.matmul %41, %7, %cst_23 {dimension_numbers = #tpu.dot_dimension_numbers<[1], [0], [0], [1], [0, 0, 1, 1], [], []>} : vector<8x32xbf16>, vector<32x128xbf16>, vector<8x128xf32> -> vector<8x128xf32>
    %43 = arith.addf %40, %42 : vector<8x128xf32>
    %44 = arith.negf %43 : vector<8x128xf32>
    %45 = math.exp %44 : vector<8x128xf32>
    %cst_24 = arith.constant 1.000000e+00 : f32
    %46 = vector.broadcast %cst_24 : f32 to vector<8x128xf32>
    %47 = arith.addf %46, %45 : vector<8x128xf32>
    %48 = arith.divf %46, %47 : vector<8x128xf32>
    %49 = math.tanh %43 : vector<8x128xf32>
    %50 = vector.extract_strided_slice %48 {offsets = [0, 0], sizes = [8, 32], strides = [1, 1]} : vector<8x128xf32> to vector<8x32xf32>
    %51 = vector.extract_strided_slice %48 {offsets = [0, 32], sizes = [8, 32], strides = [1, 1]} : vector<8x128xf32> to vector<8x32xf32>
    %52 = vector.extract_strided_slice %49 {offsets = [0, 64], sizes = [8, 32], strides = [1, 1]} : vector<8x128xf32> to vector<8x32xf32>
    %53 = vector.extract_strided_slice %48 {offsets = [0, 96], sizes = [8, 32], strides = [1, 1]} : vector<8x128xf32> to vector<8x32xf32>
    %54 = arith.mulf %51, %39 : vector<8x32xf32>
    %55 = arith.mulf %50, %52 : vector<8x32xf32>
    %56 = arith.addf %54, %55 : vector<8x32xf32>
    %57 = math.tanh %56 : vector<8x32xf32>
    %58 = arith.mulf %53, %57 : vector<8x32xf32>
    %c1_i32 = arith.constant 1 : i32
    %59 = vector.broadcast %c1_i32 : i32 to vector<8x1xi32>
    %60 = arith.cmpi sgt, %11, %59 : vector<8x1xi32>
    %61 = arith.truncf %36 : vector<8x32xf32> to vector<8x32xbf16>
    %cst_25 = arith.constant dense<0.000000e+00> : vector<8x128xf32>
    %62 = tpu.matmul %61, %8, %cst_25 {dimension_numbers = #tpu.dot_dimension_numbers<[1], [0], [0], [1], [0, 0, 1, 1], [], []>} : vector<8x32xbf16>, vector<32x128xbf16>, vector<8x128xf32> -> vector<8x128xf32>
    %63 = arith.truncf %12 : vector<8x32xf32> to vector<8x32xbf16>
    %cst_26 = arith.constant dense<0.000000e+00> : vector<8x128xf32>
    %64 = tpu.matmul %63, %9, %cst_26 {dimension_numbers = #tpu.dot_dimension_numbers<[1], [0], [0], [1], [0, 0, 1, 1], [], []>} : vector<8x32xbf16>, vector<32x128xbf16>, vector<8x128xf32> -> vector<8x128xf32>
    %65 = arith.addf %62, %64 : vector<8x128xf32>
    %66 = vector.broadcast %10 : vector<1x128xf32> to vector<8x128xf32>
    %67 = arith.addf %65, %66 : vector<8x128xf32>
    %68 = arith.negf %67 : vector<8x128xf32>
    %69 = math.exp %68 : vector<8x128xf32>
    %cst_27 = arith.constant 1.000000e+00 : f32
    %70 = vector.broadcast %cst_27 : f32 to vector<8x128xf32>
    %71 = arith.addf %70, %69 : vector<8x128xf32>
    %72 = arith.divf %70, %71 : vector<8x128xf32>
    %73 = math.tanh %67 : vector<8x128xf32>
    %74 = vector.extract_strided_slice %72 {offsets = [0, 0], sizes = [8, 32], strides = [1, 1]} : vector<8x128xf32> to vector<8x32xf32>
    %75 = vector.extract_strided_slice %72 {offsets = [0, 32], sizes = [8, 32], strides = [1, 1]} : vector<8x128xf32> to vector<8x32xf32>
    %76 = vector.extract_strided_slice %73 {offsets = [0, 64], sizes = [8, 32], strides = [1, 1]} : vector<8x128xf32> to vector<8x32xf32>
    %77 = vector.extract_strided_slice %72 {offsets = [0, 96], sizes = [8, 32], strides = [1, 1]} : vector<8x128xf32> to vector<8x32xf32>
    %78 = arith.mulf %75, %12 : vector<8x32xf32>
    %79 = arith.mulf %74, %76 : vector<8x32xf32>
    %80 = arith.addf %78, %79 : vector<8x32xf32>
    %81 = math.tanh %80 : vector<8x32xf32>
    %82 = arith.mulf %77, %81 : vector<8x32xf32>
    %83 = vector.shape_cast %33 : vector<8x1xi1> to vector<8x1xi1>
    %84 = vector.broadcast %83 : vector<8x1xi1> to vector<8x32xi1>
    %85 = arith.select %84, %82, %12 : vector<8x32xi1>, vector<8x32xf32>
    %86 = vector.shape_cast %33 : vector<8x1xi1> to vector<8x1xi1>
    %87 = vector.broadcast %86 : vector<8x1xi1> to vector<8x32xi1>
    %88 = arith.select %87, %80, %12 : vector<8x32xi1>, vector<8x32xf32>
    %89 = vector.shape_cast %60 : vector<8x1xi1> to vector<8x1xi1>
    %90 = vector.broadcast %89 : vector<8x1xi1> to vector<8x32xi1>
    %91 = arith.select %90, %58, %36 : vector<8x32xi1>, vector<8x32xf32>
    %92 = vector.shape_cast %60 : vector<8x1xi1> to vector<8x1xi1>
    %93 = vector.broadcast %92 : vector<8x1xi1> to vector<8x32xi1>
    %94 = arith.select %93, %56, %39 : vector<8x32xi1>, vector<8x32xf32>
    %c16 = arith.constant 16 : index
    %c0_28 = arith.constant 0 : index
    %95 = vector.load %arg17[%c16, %c0_28] : memref<64x128xf32, #tpu.memory_space<vmem>>, vector<8x128xf32>
    %96 = arith.truncf %91 : vector<8x32xf32> to vector<8x32xbf16>
    %cst_29 = arith.constant dense<0.000000e+00> : vector<8x128xf32>
    %97 = tpu.matmul %96, %7, %cst_29 {dimension_numbers = #tpu.dot_dimension_numbers<[1], [0], [0], [1], [0, 0, 1, 1], [], []>} : vector<8x32xbf16>, vector<32x128xbf16>, vector<8x128xf32> -> vector<8x128xf32>
    %98 = arith.addf %95, %97 : vector<8x128xf32>
    %99 = arith.negf %98 : vector<8x128xf32>
    %100 = math.exp %99 : vector<8x128xf32>
    %cst_30 = arith.constant 1.000000e+00 : f32
    %101 = vector.broadcast %cst_30 : f32 to vector<8x128xf32>
    %102 = arith.addf %101, %100 : vector<8x128xf32>
    %103 = arith.divf %101, %102 : vector<8x128xf32>
    %104 = math.tanh %98 : vector<8x128xf32>
    %105 = vector.extract_strided_slice %103 {offsets = [0, 0], sizes = [8, 32], strides = [1, 1]} : vector<8x128xf32> to vector<8x32xf32>
    %106 = vector.extract_strided_slice %103 {offsets = [0, 32], sizes = [8, 32], strides = [1, 1]} : vector<8x128xf32> to vector<8x32xf32>
    %107 = vector.extract_strided_slice %104 {offsets = [0, 64], sizes = [8, 32], strides = [1, 1]} : vector<8x128xf32> to vector<8x32xf32>
    %108 = vector.extract_strided_slice %103 {offsets = [0, 96], sizes = [8, 32], strides = [1, 1]} : vector<8x128xf32> to vector<8x32xf32>
    %109 = arith.mulf %106, %94 : vector<8x32xf32>
    %110 = arith.mulf %105, %107 : vector<8x32xf32>
    %111 = arith.addf %109, %110 : vector<8x32xf32>
    %112 = math.tanh %111 : vector<8x32xf32>
    %113 = arith.mulf %108, %112 : vector<8x32xf32>
    %c2_i32 = arith.constant 2 : i32
    %114 = vector.broadcast %c2_i32 : i32 to vector<8x1xi32>
    %115 = arith.cmpi sgt, %11, %114 : vector<8x1xi32>
    %116 = arith.truncf %91 : vector<8x32xf32> to vector<8x32xbf16>
    %cst_31 = arith.constant dense<0.000000e+00> : vector<8x128xf32>
    %117 = tpu.matmul %116, %8, %cst_31 {dimension_numbers = #tpu.dot_dimension_numbers<[1], [0], [0], [1], [0, 0, 1, 1], [], []>} : vector<8x32xbf16>, vector<32x128xbf16>, vector<8x128xf32> -> vector<8x128xf32>
    %118 = arith.truncf %85 : vector<8x32xf32> to vector<8x32xbf16>
    %cst_32 = arith.constant dense<0.000000e+00> : vector<8x128xf32>
    %119 = tpu.matmul %118, %9, %cst_32 {dimension_numbers = #tpu.dot_dimension_numbers<[1], [0], [0], [1], [0, 0, 1, 1], [], []>} : vector<8x32xbf16>, vector<32x128xbf16>, vector<8x128xf32> -> vector<8x128xf32>
    %120 = arith.addf %117, %119 : vector<8x128xf32>
    %121 = vector.broadcast %10 : vector<1x128xf32> to vector<8x128xf32>
    %122 = arith.addf %120, %121 : vector<8x128xf32>
    %123 = arith.negf %122 : vector<8x128xf32>
    %124 = math.exp %123 : vector<8x128xf32>
    %cst_33 = arith.constant 1.000000e+00 : f32
    %125 = vector.broadcast %cst_33 : f32 to vector<8x128xf32>
    %126 = arith.addf %125, %124 : vector<8x128xf32>
    %127 = arith.divf %125, %126 : vector<8x128xf32>
    %128 = math.tanh %122 : vector<8x128xf32>
    %129 = vector.extract_strided_slice %127 {offsets = [0, 0], sizes = [8, 32], strides = [1, 1]} : vector<8x128xf32> to vector<8x32xf32>
    %130 = vector.extract_strided_slice %127 {offsets = [0, 32], sizes = [8, 32], strides = [1, 1]} : vector<8x128xf32> to vector<8x32xf32>
    %131 = vector.extract_strided_slice %128 {offsets = [0, 64], sizes = [8, 32], strides = [1, 1]} : vector<8x128xf32> to vector<8x32xf32>
    %132 = vector.extract_strided_slice %127 {offsets = [0, 96], sizes = [8, 32], strides = [1, 1]} : vector<8x128xf32> to vector<8x32xf32>
    %133 = arith.mulf %130, %88 : vector<8x32xf32>
    %134 = arith.mulf %129, %131 : vector<8x32xf32>
    %135 = arith.addf %133, %134 : vector<8x32xf32>
    %136 = math.tanh %135 : vector<8x32xf32>
    %137 = arith.mulf %132, %136 : vector<8x32xf32>
    %138 = vector.shape_cast %60 : vector<8x1xi1> to vector<8x1xi1>
    %139 = vector.broadcast %138 : vector<8x1xi1> to vector<8x32xi1>
    %140 = arith.select %139, %137, %85 : vector<8x32xi1>, vector<8x32xf32>
    %141 = vector.shape_cast %60 : vector<8x1xi1> to vector<8x1xi1>
    %142 = vector.broadcast %141 : vector<8x1xi1> to vector<8x32xi1>
    %143 = arith.select %142, %135, %88 : vector<8x32xi1>, vector<8x32xf32>
    %144 = vector.shape_cast %115 : vector<8x1xi1> to vector<8x1xi1>
    %145 = vector.broadcast %144 : vector<8x1xi1> to vector<8x32xi1>
    %146 = arith.select %145, %113, %91 : vector<8x32xi1>, vector<8x32xf32>
    %147 = vector.shape_cast %115 : vector<8x1xi1> to vector<8x1xi1>
    %148 = vector.broadcast %147 : vector<8x1xi1> to vector<8x32xi1>
    %149 = arith.select %148, %111, %94 : vector<8x32xi1>, vector<8x32xf32>
    %c24 = arith.constant 24 : index
    %c0_34 = arith.constant 0 : index
    %150 = vector.load %arg17[%c24, %c0_34] : memref<64x128xf32, #tpu.memory_space<vmem>>, vector<8x128xf32>
    %151 = arith.truncf %146 : vector<8x32xf32> to vector<8x32xbf16>
    %cst_35 = arith.constant dense<0.000000e+00> : vector<8x128xf32>
    %152 = tpu.matmul %151, %7, %cst_35 {dimension_numbers = #tpu.dot_dimension_numbers<[1], [0], [0], [1], [0, 0, 1, 1], [], []>} : vector<8x32xbf16>, vector<32x128xbf16>, vector<8x128xf32> -> vector<8x128xf32>
    %153 = arith.addf %150, %152 : vector<8x128xf32>
    %154 = arith.negf %153 : vector<8x128xf32>
    %155 = math.exp %154 : vector<8x128xf32>
    %cst_36 = arith.constant 1.000000e+00 : f32
    %156 = vector.broadcast %cst_36 : f32 to vector<8x128xf32>
    %157 = arith.addf %156, %155 : vector<8x128xf32>
    %158 = arith.divf %156, %157 : vector<8x128xf32>
    %159 = math.tanh %153 : vector<8x128xf32>
    %160 = vector.extract_strided_slice %158 {offsets = [0, 0], sizes = [8, 32], strides = [1, 1]} : vector<8x128xf32> to vector<8x32xf32>
    %161 = vector.extract_strided_slice %158 {offsets = [0, 32], sizes = [8, 32], strides = [1, 1]} : vector<8x128xf32> to vector<8x32xf32>
    %162 = vector.extract_strided_slice %159 {offsets = [0, 64], sizes = [8, 32], strides = [1, 1]} : vector<8x128xf32> to vector<8x32xf32>
    %163 = vector.extract_strided_slice %158 {offsets = [0, 96], sizes = [8, 32], strides = [1, 1]} : vector<8x128xf32> to vector<8x32xf32>
    %164 = arith.mulf %161, %149 : vector<8x32xf32>
    %165 = arith.mulf %160, %162 : vector<8x32xf32>
    %166 = arith.addf %164, %165 : vector<8x32xf32>
    %167 = math.tanh %166 : vector<8x32xf32>
    %168 = arith.mulf %163, %167 : vector<8x32xf32>
    %c3_i32 = arith.constant 3 : i32
    %169 = vector.broadcast %c3_i32 : i32 to vector<8x1xi32>
    %170 = arith.cmpi sgt, %11, %169 : vector<8x1xi32>
    %171 = arith.truncf %146 : vector<8x32xf32> to vector<8x32xbf16>
    %cst_37 = arith.constant dense<0.000000e+00> : vector<8x128xf32>
    %172 = tpu.matmul %171, %8, %cst_37 {dimension_numbers = #tpu.dot_dimension_numbers<[1], [0], [0], [1], [0, 0, 1, 1], [], []>} : vector<8x32xbf16>, vector<32x128xbf16>, vector<8x128xf32> -> vector<8x128xf32>
    %173 = arith.truncf %140 : vector<8x32xf32> to vector<8x32xbf16>
    %cst_38 = arith.constant dense<0.000000e+00> : vector<8x128xf32>
    %174 = tpu.matmul %173, %9, %cst_38 {dimension_numbers = #tpu.dot_dimension_numbers<[1], [0], [0], [1], [0, 0, 1, 1], [], []>} : vector<8x32xbf16>, vector<32x128xbf16>, vector<8x128xf32> -> vector<8x128xf32>
    %175 = arith.addf %172, %174 : vector<8x128xf32>
    %176 = vector.broadcast %10 : vector<1x128xf32> to vector<8x128xf32>
    %177 = arith.addf %175, %176 : vector<8x128xf32>
    %178 = arith.negf %177 : vector<8x128xf32>
    %179 = math.exp %178 : vector<8x128xf32>
    %cst_39 = arith.constant 1.000000e+00 : f32
    %180 = vector.broadcast %cst_39 : f32 to vector<8x128xf32>
    %181 = arith.addf %180, %179 : vector<8x128xf32>
    %182 = arith.divf %180, %181 : vector<8x128xf32>
    %183 = math.tanh %177 : vector<8x128xf32>
    %184 = vector.extract_strided_slice %182 {offsets = [0, 0], sizes = [8, 32], strides = [1, 1]} : vector<8x128xf32> to vector<8x32xf32>
    %185 = vector.extract_strided_slice %182 {offsets = [0, 32], sizes = [8, 32], strides = [1, 1]} : vector<8x128xf32> to vector<8x32xf32>
    %186 = vector.extract_strided_slice %183 {offsets = [0, 64], sizes = [8, 32], strides = [1, 1]} : vector<8x128xf32> to vector<8x32xf32>
    %187 = vector.extract_strided_slice %182 {offsets = [0, 96], sizes = [8, 32], strides = [1, 1]} : vector<8x128xf32> to vector<8x32xf32>
    %188 = arith.mulf %185, %143 : vector<8x32xf32>
    %189 = arith.mulf %184, %186 : vector<8x32xf32>
    %190 = arith.addf %188, %189 : vector<8x32xf32>
    %191 = math.tanh %190 : vector<8x32xf32>
    %192 = arith.mulf %187, %191 : vector<8x32xf32>
    %193 = vector.shape_cast %115 : vector<8x1xi1> to vector<8x1xi1>
    %194 = vector.broadcast %193 : vector<8x1xi1> to vector<8x32xi1>
    %195 = arith.select %194, %192, %140 : vector<8x32xi1>, vector<8x32xf32>
    %196 = vector.shape_cast %115 : vector<8x1xi1> to vector<8x1xi1>
    %197 = vector.broadcast %196 : vector<8x1xi1> to vector<8x32xi1>
    %198 = arith.select %197, %190, %143 : vector<8x32xi1>, vector<8x32xf32>
    %199 = vector.shape_cast %170 : vector<8x1xi1> to vector<8x1xi1>
    %200 = vector.broadcast %199 : vector<8x1xi1> to vector<8x32xi1>
    %201 = arith.select %200, %168, %146 : vector<8x32xi1>, vector<8x32xf32>
    %202 = vector.shape_cast %170 : vector<8x1xi1> to vector<8x1xi1>
    %203 = vector.broadcast %202 : vector<8x1xi1> to vector<8x32xi1>
    %204 = arith.select %203, %166, %149 : vector<8x32xi1>, vector<8x32xf32>
    %c32 = arith.constant 32 : index
    %c0_40 = arith.constant 0 : index
    %205 = vector.load %arg17[%c32, %c0_40] : memref<64x128xf32, #tpu.memory_space<vmem>>, vector<8x128xf32>
    %206 = arith.truncf %201 : vector<8x32xf32> to vector<8x32xbf16>
    %cst_41 = arith.constant dense<0.000000e+00> : vector<8x128xf32>
    %207 = tpu.matmul %206, %7, %cst_41 {dimension_numbers = #tpu.dot_dimension_numbers<[1], [0], [0], [1], [0, 0, 1, 1], [], []>} : vector<8x32xbf16>, vector<32x128xbf16>, vector<8x128xf32> -> vector<8x128xf32>
    %208 = arith.addf %205, %207 : vector<8x128xf32>
    %209 = arith.negf %208 : vector<8x128xf32>
    %210 = math.exp %209 : vector<8x128xf32>
    %cst_42 = arith.constant 1.000000e+00 : f32
    %211 = vector.broadcast %cst_42 : f32 to vector<8x128xf32>
    %212 = arith.addf %211, %210 : vector<8x128xf32>
    %213 = arith.divf %211, %212 : vector<8x128xf32>
    %214 = math.tanh %208 : vector<8x128xf32>
    %215 = vector.extract_strided_slice %213 {offsets = [0, 0], sizes = [8, 32], strides = [1, 1]} : vector<8x128xf32> to vector<8x32xf32>
    %216 = vector.extract_strided_slice %213 {offsets = [0, 32], sizes = [8, 32], strides = [1, 1]} : vector<8x128xf32> to vector<8x32xf32>
    %217 = vector.extract_strided_slice %214 {offsets = [0, 64], sizes = [8, 32], strides = [1, 1]} : vector<8x128xf32> to vector<8x32xf32>
    %218 = vector.extract_strided_slice %213 {offsets = [0, 96], sizes = [8, 32], strides = [1, 1]} : vector<8x128xf32> to vector<8x32xf32>
    %219 = arith.mulf %216, %204 : vector<8x32xf32>
    %220 = arith.mulf %215, %217 : vector<8x32xf32>
    %221 = arith.addf %219, %220 : vector<8x32xf32>
    %222 = math.tanh %221 : vector<8x32xf32>
    %223 = arith.mulf %218, %222 : vector<8x32xf32>
    %c4_i32 = arith.constant 4 : i32
    %224 = vector.broadcast %c4_i32 : i32 to vector<8x1xi32>
    %225 = arith.cmpi sgt, %11, %224 : vector<8x1xi32>
    %226 = arith.truncf %201 : vector<8x32xf32> to vector<8x32xbf16>
    %cst_43 = arith.constant dense<0.000000e+00> : vector<8x128xf32>
    %227 = tpu.matmul %226, %8, %cst_43 {dimension_numbers = #tpu.dot_dimension_numbers<[1], [0], [0], [1], [0, 0, 1, 1], [], []>} : vector<8x32xbf16>, vector<32x128xbf16>, vector<8x128xf32> -> vector<8x128xf32>
    %228 = arith.truncf %195 : vector<8x32xf32> to vector<8x32xbf16>
    %cst_44 = arith.constant dense<0.000000e+00> : vector<8x128xf32>
    %229 = tpu.matmul %228, %9, %cst_44 {dimension_numbers = #tpu.dot_dimension_numbers<[1], [0], [0], [1], [0, 0, 1, 1], [], []>} : vector<8x32xbf16>, vector<32x128xbf16>, vector<8x128xf32> -> vector<8x128xf32>
    %230 = arith.addf %227, %229 : vector<8x128xf32>
    %231 = vector.broadcast %10 : vector<1x128xf32> to vector<8x128xf32>
    %232 = arith.addf %230, %231 : vector<8x128xf32>
    %233 = arith.negf %232 : vector<8x128xf32>
    %234 = math.exp %233 : vector<8x128xf32>
    %cst_45 = arith.constant 1.000000e+00 : f32
    %235 = vector.broadcast %cst_45 : f32 to vector<8x128xf32>
    %236 = arith.addf %235, %234 : vector<8x128xf32>
    %237 = arith.divf %235, %236 : vector<8x128xf32>
    %238 = math.tanh %232 : vector<8x128xf32>
    %239 = vector.extract_strided_slice %237 {offsets = [0, 0], sizes = [8, 32], strides = [1, 1]} : vector<8x128xf32> to vector<8x32xf32>
    %240 = vector.extract_strided_slice %237 {offsets = [0, 32], sizes = [8, 32], strides = [1, 1]} : vector<8x128xf32> to vector<8x32xf32>
    %241 = vector.extract_strided_slice %238 {offsets = [0, 64], sizes = [8, 32], strides = [1, 1]} : vector<8x128xf32> to vector<8x32xf32>
    %242 = vector.extract_strided_slice %237 {offsets = [0, 96], sizes = [8, 32], strides = [1, 1]} : vector<8x128xf32> to vector<8x32xf32>
    %243 = arith.mulf %240, %198 : vector<8x32xf32>
    %244 = arith.mulf %239, %241 : vector<8x32xf32>
    %245 = arith.addf %243, %244 : vector<8x32xf32>
    %246 = math.tanh %245 : vector<8x32xf32>
    %247 = arith.mulf %242, %246 : vector<8x32xf32>
    %248 = vector.shape_cast %170 : vector<8x1xi1> to vector<8x1xi1>
    %249 = vector.broadcast %248 : vector<8x1xi1> to vector<8x32xi1>
    %250 = arith.select %249, %247, %195 : vector<8x32xi1>, vector<8x32xf32>
    %251 = vector.shape_cast %170 : vector<8x1xi1> to vector<8x1xi1>
    %252 = vector.broadcast %251 : vector<8x1xi1> to vector<8x32xi1>
    %253 = arith.select %252, %245, %198 : vector<8x32xi1>, vector<8x32xf32>
    %254 = vector.shape_cast %225 : vector<8x1xi1> to vector<8x1xi1>
    %255 = vector.broadcast %254 : vector<8x1xi1> to vector<8x32xi1>
    %256 = arith.select %255, %223, %201 : vector<8x32xi1>, vector<8x32xf32>
    %257 = vector.shape_cast %225 : vector<8x1xi1> to vector<8x1xi1>
    %258 = vector.broadcast %257 : vector<8x1xi1> to vector<8x32xi1>
    %259 = arith.select %258, %221, %204 : vector<8x32xi1>, vector<8x32xf32>
    %c40 = arith.constant 40 : index
    %c0_46 = arith.constant 0 : index
    %260 = vector.load %arg17[%c40, %c0_46] : memref<64x128xf32, #tpu.memory_space<vmem>>, vector<8x128xf32>
    %261 = arith.truncf %256 : vector<8x32xf32> to vector<8x32xbf16>
    %cst_47 = arith.constant dense<0.000000e+00> : vector<8x128xf32>
    %262 = tpu.matmul %261, %7, %cst_47 {dimension_numbers = #tpu.dot_dimension_numbers<[1], [0], [0], [1], [0, 0, 1, 1], [], []>} : vector<8x32xbf16>, vector<32x128xbf16>, vector<8x128xf32> -> vector<8x128xf32>
    %263 = arith.addf %260, %262 : vector<8x128xf32>
    %264 = arith.negf %263 : vector<8x128xf32>
    %265 = math.exp %264 : vector<8x128xf32>
    %cst_48 = arith.constant 1.000000e+00 : f32
    %266 = vector.broadcast %cst_48 : f32 to vector<8x128xf32>
    %267 = arith.addf %266, %265 : vector<8x128xf32>
    %268 = arith.divf %266, %267 : vector<8x128xf32>
    %269 = math.tanh %263 : vector<8x128xf32>
    %270 = vector.extract_strided_slice %268 {offsets = [0, 0], sizes = [8, 32], strides = [1, 1]} : vector<8x128xf32> to vector<8x32xf32>
    %271 = vector.extract_strided_slice %268 {offsets = [0, 32], sizes = [8, 32], strides = [1, 1]} : vector<8x128xf32> to vector<8x32xf32>
    %272 = vector.extract_strided_slice %269 {offsets = [0, 64], sizes = [8, 32], strides = [1, 1]} : vector<8x128xf32> to vector<8x32xf32>
    %273 = vector.extract_strided_slice %268 {offsets = [0, 96], sizes = [8, 32], strides = [1, 1]} : vector<8x128xf32> to vector<8x32xf32>
    %274 = arith.mulf %271, %259 : vector<8x32xf32>
    %275 = arith.mulf %270, %272 : vector<8x32xf32>
    %276 = arith.addf %274, %275 : vector<8x32xf32>
    %277 = math.tanh %276 : vector<8x32xf32>
    %278 = arith.mulf %273, %277 : vector<8x32xf32>
    %c5_i32 = arith.constant 5 : i32
    %279 = vector.broadcast %c5_i32 : i32 to vector<8x1xi32>
    %280 = arith.cmpi sgt, %11, %279 : vector<8x1xi32>
    %281 = arith.truncf %256 : vector<8x32xf32> to vector<8x32xbf16>
    %cst_49 = arith.constant dense<0.000000e+00> : vector<8x128xf32>
    %282 = tpu.matmul %281, %8, %cst_49 {dimension_numbers = #tpu.dot_dimension_numbers<[1], [0], [0], [1], [0, 0, 1, 1], [], []>} : vector<8x32xbf16>, vector<32x128xbf16>, vector<8x128xf32> -> vector<8x128xf32>
    %283 = arith.truncf %250 : vector<8x32xf32> to vector<8x32xbf16>
    %cst_50 = arith.constant dense<0.000000e+00> : vector<8x128xf32>
    %284 = tpu.matmul %283, %9, %cst_50 {dimension_numbers = #tpu.dot_dimension_numbers<[1], [0], [0], [1], [0, 0, 1, 1], [], []>} : vector<8x32xbf16>, vector<32x128xbf16>, vector<8x128xf32> -> vector<8x128xf32>
    %285 = arith.addf %282, %284 : vector<8x128xf32>
    %286 = vector.broadcast %10 : vector<1x128xf32> to vector<8x128xf32>
    %287 = arith.addf %285, %286 : vector<8x128xf32>
    %288 = arith.negf %287 : vector<8x128xf32>
    %289 = math.exp %288 : vector<8x128xf32>
    %cst_51 = arith.constant 1.000000e+00 : f32
    %290 = vector.broadcast %cst_51 : f32 to vector<8x128xf32>
    %291 = arith.addf %290, %289 : vector<8x128xf32>
    %292 = arith.divf %290, %291 : vector<8x128xf32>
    %293 = math.tanh %287 : vector<8x128xf32>
    %294 = vector.extract_strided_slice %292 {offsets = [0, 0], sizes = [8, 32], strides = [1, 1]} : vector<8x128xf32> to vector<8x32xf32>
    %295 = vector.extract_strided_slice %292 {offsets = [0, 32], sizes = [8, 32], strides = [1, 1]} : vector<8x128xf32> to vector<8x32xf32>
    %296 = vector.extract_strided_slice %293 {offsets = [0, 64], sizes = [8, 32], strides = [1, 1]} : vector<8x128xf32> to vector<8x32xf32>
    %297 = vector.extract_strided_slice %292 {offsets = [0, 96], sizes = [8, 32], strides = [1, 1]} : vector<8x128xf32> to vector<8x32xf32>
    %298 = arith.mulf %295, %253 : vector<8x32xf32>
    %299 = arith.mulf %294, %296 : vector<8x32xf32>
    %300 = arith.addf %298, %299 : vector<8x32xf32>
    %301 = math.tanh %300 : vector<8x32xf32>
    %302 = arith.mulf %297, %301 : vector<8x32xf32>
    %303 = vector.shape_cast %225 : vector<8x1xi1> to vector<8x1xi1>
    %304 = vector.broadcast %303 : vector<8x1xi1> to vector<8x32xi1>
    %305 = arith.select %304, %302, %250 : vector<8x32xi1>, vector<8x32xf32>
    %306 = vector.shape_cast %225 : vector<8x1xi1> to vector<8x1xi1>
    %307 = vector.broadcast %306 : vector<8x1xi1> to vector<8x32xi1>
    %308 = arith.select %307, %300, %253 : vector<8x32xi1>, vector<8x32xf32>
    %309 = vector.shape_cast %280 : vector<8x1xi1> to vector<8x1xi1>
    %310 = vector.broadcast %309 : vector<8x1xi1> to vector<8x32xi1>
    %311 = arith.select %310, %278, %256 : vector<8x32xi1>, vector<8x32xf32>
    %312 = vector.shape_cast %280 : vector<8x1xi1> to vector<8x1xi1>
    %313 = vector.broadcast %312 : vector<8x1xi1> to vector<8x32xi1>
    %314 = arith.select %313, %276, %259 : vector<8x32xi1>, vector<8x32xf32>
    %c48 = arith.constant 48 : index
    %c0_52 = arith.constant 0 : index
    %315 = vector.load %arg17[%c48, %c0_52] : memref<64x128xf32, #tpu.memory_space<vmem>>, vector<8x128xf32>
    %316 = arith.truncf %311 : vector<8x32xf32> to vector<8x32xbf16>
    %cst_53 = arith.constant dense<0.000000e+00> : vector<8x128xf32>
    %317 = tpu.matmul %316, %7, %cst_53 {dimension_numbers = #tpu.dot_dimension_numbers<[1], [0], [0], [1], [0, 0, 1, 1], [], []>} : vector<8x32xbf16>, vector<32x128xbf16>, vector<8x128xf32> -> vector<8x128xf32>
    %318 = arith.addf %315, %317 : vector<8x128xf32>
    %319 = arith.negf %318 : vector<8x128xf32>
    %320 = math.exp %319 : vector<8x128xf32>
    %cst_54 = arith.constant 1.000000e+00 : f32
    %321 = vector.broadcast %cst_54 : f32 to vector<8x128xf32>
    %322 = arith.addf %321, %320 : vector<8x128xf32>
    %323 = arith.divf %321, %322 : vector<8x128xf32>
    %324 = math.tanh %318 : vector<8x128xf32>
    %325 = vector.extract_strided_slice %323 {offsets = [0, 0], sizes = [8, 32], strides = [1, 1]} : vector<8x128xf32> to vector<8x32xf32>
    %326 = vector.extract_strided_slice %323 {offsets = [0, 32], sizes = [8, 32], strides = [1, 1]} : vector<8x128xf32> to vector<8x32xf32>
    %327 = vector.extract_strided_slice %324 {offsets = [0, 64], sizes = [8, 32], strides = [1, 1]} : vector<8x128xf32> to vector<8x32xf32>
    %328 = vector.extract_strided_slice %323 {offsets = [0, 96], sizes = [8, 32], strides = [1, 1]} : vector<8x128xf32> to vector<8x32xf32>
    %329 = arith.mulf %326, %314 : vector<8x32xf32>
    %330 = arith.mulf %325, %327 : vector<8x32xf32>
    %331 = arith.addf %329, %330 : vector<8x32xf32>
    %332 = math.tanh %331 : vector<8x32xf32>
    %333 = arith.mulf %328, %332 : vector<8x32xf32>
    %c6_i32 = arith.constant 6 : i32
    %334 = vector.broadcast %c6_i32 : i32 to vector<8x1xi32>
    %335 = arith.cmpi sgt, %11, %334 : vector<8x1xi32>
    %336 = arith.truncf %311 : vector<8x32xf32> to vector<8x32xbf16>
    %cst_55 = arith.constant dense<0.000000e+00> : vector<8x128xf32>
    %337 = tpu.matmul %336, %8, %cst_55 {dimension_numbers = #tpu.dot_dimension_numbers<[1], [0], [0], [1], [0, 0, 1, 1], [], []>} : vector<8x32xbf16>, vector<32x128xbf16>, vector<8x128xf32> -> vector<8x128xf32>
    %338 = arith.truncf %305 : vector<8x32xf32> to vector<8x32xbf16>
    %cst_56 = arith.constant dense<0.000000e+00> : vector<8x128xf32>
    %339 = tpu.matmul %338, %9, %cst_56 {dimension_numbers = #tpu.dot_dimension_numbers<[1], [0], [0], [1], [0, 0, 1, 1], [], []>} : vector<8x32xbf16>, vector<32x128xbf16>, vector<8x128xf32> -> vector<8x128xf32>
    %340 = arith.addf %337, %339 : vector<8x128xf32>
    %341 = vector.broadcast %10 : vector<1x128xf32> to vector<8x128xf32>
    %342 = arith.addf %340, %341 : vector<8x128xf32>
    %343 = arith.negf %342 : vector<8x128xf32>
    %344 = math.exp %343 : vector<8x128xf32>
    %cst_57 = arith.constant 1.000000e+00 : f32
    %345 = vector.broadcast %cst_57 : f32 to vector<8x128xf32>
    %346 = arith.addf %345, %344 : vector<8x128xf32>
    %347 = arith.divf %345, %346 : vector<8x128xf32>
    %348 = math.tanh %342 : vector<8x128xf32>
    %349 = vector.extract_strided_slice %347 {offsets = [0, 0], sizes = [8, 32], strides = [1, 1]} : vector<8x128xf32> to vector<8x32xf32>
    %350 = vector.extract_strided_slice %347 {offsets = [0, 32], sizes = [8, 32], strides = [1, 1]} : vector<8x128xf32> to vector<8x32xf32>
    %351 = vector.extract_strided_slice %348 {offsets = [0, 64], sizes = [8, 32], strides = [1, 1]} : vector<8x128xf32> to vector<8x32xf32>
    %352 = vector.extract_strided_slice %347 {offsets = [0, 96], sizes = [8, 32], strides = [1, 1]} : vector<8x128xf32> to vector<8x32xf32>
    %353 = arith.mulf %350, %308 : vector<8x32xf32>
    %354 = arith.mulf %349, %351 : vector<8x32xf32>
    %355 = arith.addf %353, %354 : vector<8x32xf32>
    %356 = math.tanh %355 : vector<8x32xf32>
    %357 = arith.mulf %352, %356 : vector<8x32xf32>
    %358 = vector.shape_cast %280 : vector<8x1xi1> to vector<8x1xi1>
    %359 = vector.broadcast %358 : vector<8x1xi1> to vector<8x32xi1>
    %360 = arith.select %359, %357, %305 : vector<8x32xi1>, vector<8x32xf32>
    %361 = vector.shape_cast %280 : vector<8x1xi1> to vector<8x1xi1>
    %362 = vector.broadcast %361 : vector<8x1xi1> to vector<8x32xi1>
    %363 = arith.select %362, %355, %308 : vector<8x32xi1>, vector<8x32xf32>
    %364 = vector.shape_cast %335 : vector<8x1xi1> to vector<8x1xi1>
    %365 = vector.broadcast %364 : vector<8x1xi1> to vector<8x32xi1>
    %366 = arith.select %365, %333, %311 : vector<8x32xi1>, vector<8x32xf32>
    %367 = vector.shape_cast %335 : vector<8x1xi1> to vector<8x1xi1>
    %368 = vector.broadcast %367 : vector<8x1xi1> to vector<8x32xi1>
    %369 = arith.select %368, %331, %314 : vector<8x32xi1>, vector<8x32xf32>
    %c56 = arith.constant 56 : index
    %c0_58 = arith.constant 0 : index
    %370 = vector.load %arg17[%c56, %c0_58] : memref<64x128xf32, #tpu.memory_space<vmem>>, vector<8x128xf32>
    %371 = arith.truncf %366 : vector<8x32xf32> to vector<8x32xbf16>
    %cst_59 = arith.constant dense<0.000000e+00> : vector<8x128xf32>
    %372 = tpu.matmul %371, %7, %cst_59 {dimension_numbers = #tpu.dot_dimension_numbers<[1], [0], [0], [1], [0, 0, 1, 1], [], []>} : vector<8x32xbf16>, vector<32x128xbf16>, vector<8x128xf32> -> vector<8x128xf32>
    %373 = arith.addf %370, %372 : vector<8x128xf32>
    %374 = arith.negf %373 : vector<8x128xf32>
    %375 = math.exp %374 : vector<8x128xf32>
    %cst_60 = arith.constant 1.000000e+00 : f32
    %376 = vector.broadcast %cst_60 : f32 to vector<8x128xf32>
    %377 = arith.addf %376, %375 : vector<8x128xf32>
    %378 = arith.divf %376, %377 : vector<8x128xf32>
    %379 = math.tanh %373 : vector<8x128xf32>
    %380 = vector.extract_strided_slice %378 {offsets = [0, 0], sizes = [8, 32], strides = [1, 1]} : vector<8x128xf32> to vector<8x32xf32>
    %381 = vector.extract_strided_slice %378 {offsets = [0, 32], sizes = [8, 32], strides = [1, 1]} : vector<8x128xf32> to vector<8x32xf32>
    %382 = vector.extract_strided_slice %379 {offsets = [0, 64], sizes = [8, 32], strides = [1, 1]} : vector<8x128xf32> to vector<8x32xf32>
    %383 = vector.extract_strided_slice %378 {offsets = [0, 96], sizes = [8, 32], strides = [1, 1]} : vector<8x128xf32> to vector<8x32xf32>
    %384 = arith.mulf %381, %369 : vector<8x32xf32>
    %385 = arith.mulf %380, %382 : vector<8x32xf32>
    %386 = arith.addf %384, %385 : vector<8x32xf32>
    %387 = math.tanh %386 : vector<8x32xf32>
    %388 = arith.mulf %383, %387 : vector<8x32xf32>
    %c7_i32 = arith.constant 7 : i32
    %389 = vector.broadcast %c7_i32 : i32 to vector<8x1xi32>
    %390 = arith.cmpi sgt, %11, %389 : vector<8x1xi32>
    %391 = arith.truncf %366 : vector<8x32xf32> to vector<8x32xbf16>
    %cst_61 = arith.constant dense<0.000000e+00> : vector<8x128xf32>
    %392 = tpu.matmul %391, %8, %cst_61 {dimension_numbers = #tpu.dot_dimension_numbers<[1], [0], [0], [1], [0, 0, 1, 1], [], []>} : vector<8x32xbf16>, vector<32x128xbf16>, vector<8x128xf32> -> vector<8x128xf32>
    %393 = arith.truncf %360 : vector<8x32xf32> to vector<8x32xbf16>
    %cst_62 = arith.constant dense<0.000000e+00> : vector<8x128xf32>
    %394 = tpu.matmul %393, %9, %cst_62 {dimension_numbers = #tpu.dot_dimension_numbers<[1], [0], [0], [1], [0, 0, 1, 1], [], []>} : vector<8x32xbf16>, vector<32x128xbf16>, vector<8x128xf32> -> vector<8x128xf32>
    %395 = arith.addf %392, %394 : vector<8x128xf32>
    %396 = vector.broadcast %10 : vector<1x128xf32> to vector<8x128xf32>
    %397 = arith.addf %395, %396 : vector<8x128xf32>
    %398 = arith.negf %397 : vector<8x128xf32>
    %399 = math.exp %398 : vector<8x128xf32>
    %cst_63 = arith.constant 1.000000e+00 : f32
    %400 = vector.broadcast %cst_63 : f32 to vector<8x128xf32>
    %401 = arith.addf %400, %399 : vector<8x128xf32>
    %402 = arith.divf %400, %401 : vector<8x128xf32>
    %403 = math.tanh %397 : vector<8x128xf32>
    %404 = vector.extract_strided_slice %402 {offsets = [0, 0], sizes = [8, 32], strides = [1, 1]} : vector<8x128xf32> to vector<8x32xf32>
    %405 = vector.extract_strided_slice %402 {offsets = [0, 32], sizes = [8, 32], strides = [1, 1]} : vector<8x128xf32> to vector<8x32xf32>
    %406 = vector.extract_strided_slice %403 {offsets = [0, 64], sizes = [8, 32], strides = [1, 1]} : vector<8x128xf32> to vector<8x32xf32>
    %407 = vector.extract_strided_slice %402 {offsets = [0, 96], sizes = [8, 32], strides = [1, 1]} : vector<8x128xf32> to vector<8x32xf32>
    %408 = arith.mulf %405, %363 : vector<8x32xf32>
    %409 = arith.mulf %404, %406 : vector<8x32xf32>
    %410 = arith.addf %408, %409 : vector<8x32xf32>
    %411 = math.tanh %410 : vector<8x32xf32>
    %412 = arith.mulf %407, %411 : vector<8x32xf32>
    %413 = vector.shape_cast %335 : vector<8x1xi1> to vector<8x1xi1>
    %414 = vector.broadcast %413 : vector<8x1xi1> to vector<8x32xi1>
    %415 = arith.select %414, %412, %360 : vector<8x32xi1>, vector<8x32xf32>
    %416 = vector.shape_cast %335 : vector<8x1xi1> to vector<8x1xi1>
    %417 = vector.broadcast %416 : vector<8x1xi1> to vector<8x32xi1>
    %418 = arith.select %417, %410, %363 : vector<8x32xi1>, vector<8x32xf32>
    %419 = vector.shape_cast %390 : vector<8x1xi1> to vector<8x1xi1>
    %420 = vector.broadcast %419 : vector<8x1xi1> to vector<8x32xi1>
    %421 = arith.select %420, %388, %366 : vector<8x32xi1>, vector<8x32xf32>
    %422 = vector.shape_cast %390 : vector<8x1xi1> to vector<8x1xi1>
    %423 = vector.broadcast %422 : vector<8x1xi1> to vector<8x32xi1>
    %424 = arith.select %423, %386, %369 : vector<8x32xi1>, vector<8x32xf32>
    %425 = arith.truncf %421 : vector<8x32xf32> to vector<8x32xbf16>
    %cst_64 = arith.constant dense<0.000000e+00> : vector<8x128xf32>
    %426 = tpu.matmul %425, %8, %cst_64 {dimension_numbers = #tpu.dot_dimension_numbers<[1], [0], [0], [1], [0, 0, 1, 1], [], []>} : vector<8x32xbf16>, vector<32x128xbf16>, vector<8x128xf32> -> vector<8x128xf32>
    %427 = arith.truncf %415 : vector<8x32xf32> to vector<8x32xbf16>
    %cst_65 = arith.constant dense<0.000000e+00> : vector<8x128xf32>
    %428 = tpu.matmul %427, %9, %cst_65 {dimension_numbers = #tpu.dot_dimension_numbers<[1], [0], [0], [1], [0, 0, 1, 1], [], []>} : vector<8x32xbf16>, vector<32x128xbf16>, vector<8x128xf32> -> vector<8x128xf32>
    %429 = arith.addf %426, %428 : vector<8x128xf32>
    %430 = vector.broadcast %10 : vector<1x128xf32> to vector<8x128xf32>
    %431 = arith.addf %429, %430 : vector<8x128xf32>
    %432 = arith.negf %431 : vector<8x128xf32>
    %433 = math.exp %432 : vector<8x128xf32>
    %cst_66 = arith.constant 1.000000e+00 : f32
    %434 = vector.broadcast %cst_66 : f32 to vector<8x128xf32>
    %435 = arith.addf %434, %433 : vector<8x128xf32>
    %436 = arith.divf %434, %435 : vector<8x128xf32>
    %437 = math.tanh %431 : vector<8x128xf32>
    %438 = vector.extract_strided_slice %436 {offsets = [0, 0], sizes = [8, 32], strides = [1, 1]} : vector<8x128xf32> to vector<8x32xf32>
    %439 = vector.extract_strided_slice %436 {offsets = [0, 32], sizes = [8, 32], strides = [1, 1]} : vector<8x128xf32> to vector<8x32xf32>
    %440 = vector.extract_strided_slice %437 {offsets = [0, 64], sizes = [8, 32], strides = [1, 1]} : vector<8x128xf32> to vector<8x32xf32>
    %441 = vector.extract_strided_slice %436 {offsets = [0, 96], sizes = [8, 32], strides = [1, 1]} : vector<8x128xf32> to vector<8x32xf32>
    %442 = arith.mulf %439, %418 : vector<8x32xf32>
    %443 = arith.mulf %438, %440 : vector<8x32xf32>
    %444 = arith.addf %442, %443 : vector<8x32xf32>
    %445 = math.tanh %444 : vector<8x32xf32>
    %446 = arith.mulf %441, %445 : vector<8x32xf32>
    %447 = vector.shape_cast %390 : vector<8x1xi1> to vector<8x1xi1>
    %448 = vector.broadcast %447 : vector<8x1xi1> to vector<8x32xi1>
    %449 = arith.select %448, %446, %415 : vector<8x32xi1>, vector<8x32xf32>
    %450 = vector.shape_cast %390 : vector<8x1xi1> to vector<8x1xi1>
    %451 = vector.broadcast %450 : vector<8x1xi1> to vector<8x32xi1>
    %452 = arith.select %451, %444, %418 : vector<8x32xi1>, vector<8x32xf32>
    %c0_67 = arith.constant 0 : index
    %c0_68 = arith.constant 0 : index
    %c0_69 = arith.constant 0 : index
    %453 = vector.load %arg15[%c0_67, %c0_68, %c0_69] : memref<2x8x32xf32, #tpu.memory_space<vmem>>, vector<1x8x32xf32>
    %454 = vector.shape_cast %453 : vector<1x8x32xf32> to vector<8x32xf32>
    %455 = vector.shape_cast %421 : vector<8x32xf32> to vector<1x8x32xf32>
    tpu.vector_store %arg15[%c0_67, %c0_68, %c0_69], %455 {strides = array<i32>} : memref<2x8x32xf32, #tpu.memory_space<vmem>>, vector<1x8x32xf32>,
    %c0_70 = arith.constant 0 : index
    %c0_71 = arith.constant 0 : index
    %c0_72 = arith.constant 0 : index
    %456 = vector.load %arg16[%c0_70, %c0_71, %c0_72] : memref<2x8x32xf32, #tpu.memory_space<vmem>>, vector<1x8x32xf32>
    %457 = vector.shape_cast %456 : vector<1x8x32xf32> to vector<8x32xf32>
    %458 = vector.shape_cast %424 : vector<8x32xf32> to vector<1x8x32xf32>
    tpu.vector_store %arg16[%c0_70, %c0_71, %c0_72], %458 {strides = array<i32>} : memref<2x8x32xf32, #tpu.memory_space<vmem>>, vector<1x8x32xf32>,
    %c1 = arith.constant 1 : index
    %c0_73 = arith.constant 0 : index
    %c0_74 = arith.constant 0 : index
    %459 = vector.load %arg15[%c1, %c0_73, %c0_74] : memref<2x8x32xf32, #tpu.memory_space<vmem>>, vector<1x8x32xf32>
    %460 = vector.shape_cast %459 : vector<1x8x32xf32> to vector<8x32xf32>
    %461 = vector.shape_cast %449 : vector<8x32xf32> to vector<1x8x32xf32>
    tpu.vector_store %arg15[%c1, %c0_73, %c0_74], %461 {strides = array<i32>} : memref<2x8x32xf32, #tpu.memory_space<vmem>>, vector<1x8x32xf32>,
    %c1_75 = arith.constant 1 : index
    %c0_76 = arith.constant 0 : index
    %c0_77 = arith.constant 0 : index
    %462 = vector.load %arg16[%c1_75, %c0_76, %c0_77] : memref<2x8x32xf32, #tpu.memory_space<vmem>>, vector<1x8x32xf32>
    %463 = vector.shape_cast %462 : vector<1x8x32xf32> to vector<8x32xf32>
    %464 = vector.shape_cast %452 : vector<8x32xf32> to vector<1x8x32xf32>
    tpu.vector_store %arg16[%c1_75, %c0_76, %c0_77], %464 {strides = array<i32>} : memref<2x8x32xf32, #tpu.memory_space<vmem>>, vector<1x8x32xf32>,
    %465 = arith.truncf %449 : vector<8x32xf32> to vector<8x32xbf16>
    %c0_78 = arith.constant 0 : index
    %c0_79 = arith.constant 0 : index
    %466 = vector.load %arg8[%c0_78, %c0_79] : memref<32x256xbf16, #tpu.memory_space<vmem>>, vector<32x256xbf16>
    %cst_80 = arith.constant dense<0.000000e+00> : vector<8x256xf32>
    %467 = tpu.matmul %465, %466, %cst_80 {dimension_numbers = #tpu.dot_dimension_numbers<[1], [0], [0], [1], [0, 0, 1, 1], [], []>} : vector<8x32xbf16>, vector<32x256xbf16>, vector<8x256xf32> -> vector<8x256xf32>
    %c0_81 = arith.constant 0 : index
    %c0_82 = arith.constant 0 : index
    %468 = vector.load %arg9[%c0_81, %c0_82] : memref<1x256xf32, #tpu.memory_space<vmem>>, vector<1x256xf32>
    %469 = vector.broadcast %468 : vector<1x256xf32> to vector<8x256xf32>
    %470 = arith.addf %467, %469 : vector<8x256xf32>
    %471 = math.tanh %470 : vector<8x256xf32>
    %472 = arith.truncf %471 : vector<8x256xf32> to vector<8x256xbf16>
    %c0_83 = arith.constant 0 : index
    %c0_84 = arith.constant 0 : index
    %473 = vector.load %arg10[%c0_83, %c0_84] : memref<256x32xbf16, #tpu.memory_space<vmem>>, vector<256x32xbf16>
    %cst_85 = arith.constant dense<0.000000e+00> : vector<8x32xf32>
    %474 = tpu.matmul %472, %473, %cst_85 {dimension_numbers = #tpu.dot_dimension_numbers<[1], [0], [0], [1], [0, 0, 1, 1], [], []>} : vector<8x256xbf16>, vector<256x32xbf16>, vector<8x32xf32> -> vector<8x32xf32>
    %c0_86 = arith.constant 0 : index
    %c0_87 = arith.constant 0 : index
    %475 = vector.load %arg11[%c0_86, %c0_87] : memref<1x32xf32, #tpu.memory_space<vmem>>, vector<1x32xf32>
    %476 = vector.broadcast %475 : vector<1x32xf32> to vector<8x32xf32>
    %477 = arith.addf %474, %476 : vector<8x32xf32>
    %478 = math.tanh %477 : vector<8x32xf32>
    %479 = arith.truncf %478 : vector<8x32xf32> to vector<8x32xbf16>
    %c0_88 = arith.constant 0 : index
    %c0_89 = arith.constant 0 : index
    %480 = vector.load %arg12[%c0_88, %c0_89] : memref<32x2xbf16, #tpu.memory_space<vmem>>, vector<32x2xbf16>
    %cst_90 = arith.constant dense<0.000000e+00> : vector<8x2xf32>
    %481 = tpu.matmul %479, %480, %cst_90 {dimension_numbers = #tpu.dot_dimension_numbers<[1], [0], [0], [1], [0, 0, 1, 1], [], []>} : vector<8x32xbf16>, vector<32x2xbf16>, vector<8x2xf32> -> vector<8x2xf32>
    %c0_91 = arith.constant 0 : index
    %c0_92 = arith.constant 0 : index
    %482 = vector.load %arg13[%c0_91, %c0_92] : memref<1x2xf32, #tpu.memory_space<vmem>>, vector<1x2xf32>
    %483 = vector.broadcast %482 : vector<1x2xf32> to vector<8x2xf32>
    %484 = arith.addf %481, %483 : vector<8x2xf32>
    %c0_93 = arith.constant 0 : index
    %c0_94 = arith.constant 0 : index
    %485 = vector.load %arg14[%c0_93, %c0_94] : memref<8x2xf32, #tpu.memory_space<vmem>>, vector<8x2xf32>
    tpu.vector_store %arg14[%c0_93, %c0_94], %484 {strides = array<i32>} : memref<8x2xf32, #tpu.memory_space<vmem>>, vector<8x2xf32>,
    return
  }
}

</mosaic_0001>

<bundles_post_ra>
// kernel: tpu_custom_call.1
= control target key start
LH: loop header
LB: loop body
LE: loop exit
PB: predicated region body
PF: predicated region fallthrough
CT: control target
= control target key end

     0   :  { %s2792_s0 = inlined_call_operand.vmem [shape: bf16[64,32], index: 0, kind: input, shape index: {}]   ;;  %s2793_s1 = inlined_call_operand.vmem [shape: s32[8,1], index: 1, kind: input, shape index: {}]   ;;  %s2794_s2 = inlined_call_operand.vmem [shape: bf16[32,128], index: 2, kind: input, shape index: {}]   ;;  %s2795_s3 = inlined_call_operand.vmem [shape: bf16[32,128], index: 3, kind: input, shape index: {}]   ;;  %s2796_s4 = inlined_call_operand.vmem [shape: f32[1,128], index: 4, kind: input, shape index: {}]   ;;  %s2797_s5 = inlined_call_operand.vmem [shape: bf16[32,128], index: 5, kind: input, shape index: {}]   ;;  %s2798_s6 = inlined_call_operand.vmem [shape: bf16[32,128], index: 6, kind: input, shape index: {}]   ;;  %s2799_s7 = inlined_call_operand.vmem [shape: f32[1,128], index: 7, kind: input, shape index: {}]   ;;  %s2800_s8 = inlined_call_operand.vmem [shape: bf16[32,256], index: 8, kind: input, shape index: {}]   ;;  %s2801_s9 = inlined_call_operand.vmem [shape: f32[1,256], index: 9, kind: input, shape index: {}]   ;;  %s2802_s10 = inlined_call_operand.vmem [shape: bf16[256,32], index: 10, kind: input, shape index: {}]   ;;  %s2803_s11 = inlined_call_operand.vmem [shape: f32[1,32], index: 11, kind: input, shape index: {}]   ;;  %s2804_s12 = inlined_call_operand.vmem [shape: bf16[32,2], index: 12, kind: input, shape index: {}]   ;;  %s2805_s13 = inlined_call_operand.vmem [shape: f32[1,2], index: 13, kind: input, shape index: {}]   ;;  %s2806_s14 = inlined_call_operand.vmem [shape: f32[8,2], index: 14, kind: output, shape index: {0}]   ;;  %s2807_s15 = inlined_call_operand.hbm [shape: f32[2,8,32], index: 15, kind: output, shape index: {1}]   ;;  %s2808_s16 = inlined_call_operand.hbm [shape: f32[2,8,32], index: 16, kind: output, shape index: {2}]  }
   0x1   :  { %2810 = sst [smem:[#allocation9_spill]] %s2792_s0 }
   0x2   :  { %22 = vsyncpa [#allocation4], 0  ;;  %v1833_v0 = vld [vmem:[%s2794_s2 + $0x8] sm:$0xff]  ;;  %v1832_v2 = vld [vmem:[%s2794_s2] sm:$0xff]  ;;  %v2066_v3 = vmov 0  }
   0x3   :  { %v2165_v1 = vld [vmem:[%s2795_s3 + $0x8] sm:$0xff]  ;;  %1870 = vset.pattern.permute.xlu1 %v2066_v3  ;;  %1871 = vset.pattern.permute.xlu2 %v2066_v3  ;;  %v2176_v4 = vld [vmem:[%s2795_s3] sm:$0xff] }
   0x4   :  { %120 = vmatpush.bf16.msra.mxu0 %v1833_v0  ;;  %187 = vmatpush.bf16.msra.mxu1 %v2165_v1 }
   0x5   :  { %254 = vmatpush.bf16.msra.mxu2 %v2165_v1  ;;  %1872 = vset.pattern.permute.xlu0 %v2066_v3 }
   0x6   :  { %23 = vsyncpa [#allocation6], 0  ;;  %s2811_s30 = sld [smem:[#allocation9_spill]]  ;;  %vm101_vm0 = vcmask 261120   ;;  %v2192_v6 = vld [vmem:[%s2796_s4] ss:$0 sm:$0xff] }
   0x7   :  { %s2067_s17 = smov 64   ;;  %s2068_s18 = smov 32   ;;  %v2203_v32 = vld [vmem:[%s2793_s1] sm:$0xff]  ;;  %v2211_v34 = vld [vmem:[%s2798_s6 + $0x8] sm:$0xff] }
   0x8   :  { %121 = vmatpush.bf16.msra.mxu0 %v1832_v2  ;;  %188 = vmatpush.bf16.msra.mxu1 %v2176_v4  ;;  %vm232_vm5 = vcmp.gt.s32.totalorder %v2203_v32, 0  ;;  %v2216_v35 = vld [vmem:[%s2797_s5 + $0x8] sm:$0xff]  ;;  %v2222_v36 = vld [vmem:[%s2798_s6] sm:$0xff]  ;;  %vm299_vm15 = vcmp.gt.s32.totalorder %v2203_v32, 1  ;;  %s2070_s29 = smov [#allocation3]   ;;  %s1615_s0 = sshll.u32 %s2807_s15, 4  ;;  %s1616_s0 = int_to_ptr.hbm [resolvable:$true] %s1615_s0 }
   0x9   :  { %255 = vmatpush.bf16.msra.mxu2 %v2176_v4  ;;  %v233_v33 = vsel %vm232_vm5, 1, %v2066_v3  ;;  %318 = vmatpush.bf16.msra.mxu3 %v2211_v34  ;;  %v2228_v37 = vld [vmem:[%s2797_s5] sm:$0xff]  ;;  %s1613_s2 = sshll.u32 %s2070_s29, 4  ;;  %s2072_s19 = smov 8   ;;  %s1614_s2 = int_to_ptr.vmem [resolvable:$true] %s1613_s2 }
   0xa   :  { %v2262_v46 = vld [vmem:[%s2799_s7] ss:$0 sm:$0xff]  ;;  %s2073_s20 = smov [#allocation5]   ;;  %s1628_s22 = sshll.u32 %s2808_s16, 4  ;;  %s1629_s22 = int_to_ptr.hbm [resolvable:$true] %s1628_s22 }
   0xb   :  { %189 = vmatmul.bf16.vlgmr.msra.gmra.mxu1 %v2066_v3 }
   0xc   :  { %v1828_v5 = vld [vmem:[%s2811_s30] sm:$0xff]  ;;  %343 = vmatpush.bf16.msrb.mxu1 %v2216_v35  ;;  %766 = vmatpush.bf16.msrb.mxu0 %v2216_v35 }
   0xd   :  { %414 = vmatpush.bf16.msrb.mxu2 %v2165_v1  ;;  %1671 = vmatmul.msk.bf16.vlgmr.msra.gmra.mxu0 %vm101_vm0, %v1828_v5 }
   0xe   :  { %319 = vmatpush.bf16.msra.mxu3 %v2222_v36 }
  0x10   :  { %344 = vmatpush.bf16.msrb.mxu1 %v2228_v37  ;;  %767 = vmatpush.bf16.msrb.mxu0 %v2228_v37 }
  0x11   :  { %415 = vmatpush.bf16.msrb.mxu2 %v2176_v4  ;;  %320 = vmatmul.bf16.vlgmr.msra.gmra.mxu3 %v2066_v3 }
  0x12   :  { %473 = vmatpush.bf16.msrb.mxu3 %v2211_v34 }
  0x14   :  { %486 = vmatpush.bf16.msra.mxu1 %v2216_v35  ;;  %974 = vmatpush.bf16.msra.mxu0 %v2165_v1 }
  0x16   :  { %474 = vmatpush.bf16.msrb.mxu3 %v2222_v36 }
  0x18   :  { %487 = vmatpush.bf16.msra.mxu1 %v2228_v37  ;;  %975 = vmatpush.bf16.msra.mxu0 %v2176_v4 }
  0x1a   :  { %613 = vmatpush.bf16.msra.mxu3 %v2211_v34 }
  0x1e   :  { %614 = vmatpush.bf16.msra.mxu3 %v2222_v36 }
  0x88   :  { %v190_v8 = vpop.f32.mrf.mxu1 }
  0x8a   :  { %v123_v7 = vpop.f32.mrf.mxu0 }
  0x8b   :  { %v124_v9 = vadd.f32 %v2192_v6, %v123_v7 }
  0x8d   :  { %v194_v10 = vadd.f32 %v190_v8, %v124_v9 }
  0x8f   :  { %1877 = vtanh.f32 %v194_v10  ;;  %v1683_v13 = vmul.f32 -1.442695, %v194_v10 }
  0x90   :  { %v192_v11 = vpop.f32.mrf.mxu1 }
  0x91   :  { %1879 = vpow2.f32 %v1683_v13 }
  0x92   :  { %v125_v49 = vpop.f32.mrf.mxu0 }
  0x93   :  { %v126_v51 = vadd.f32 %v2192_v6, %v125_v49 }
  0x94   :  { %v321_v44 = vpop.f32.mrf.mxu3 }
  0x95   :  { %v1878_v12 = vpop.eup %1877 }
  0x96   :  { %217 = vrot.lane.b32.xlu0 %v1878_v12, %s2067_s17 }
  0x97   :  { %v1880_v14 = vpop.eup %1879 }
  0x98   :  { %v198_v15 = vadd.f32 1.0, %v1880_v14 }
  0x9a   :  { %1881 = vrcp.f32 %v198_v15  ;;  %v210_v21 = vand.u32 2147483648, %v198_v15  ;;  %vm204_vm2 = vweird.f32 %v198_v15  ;;  %v208_v22 = vand.u32 2147483647, %v198_v15 }
  0x9c   :  { %v211_v24 = vor.u32 1.1754944e-38, %v210_v21  ;;  %vm209_vm4 = vcmp.eq.f32.partialorder %v208_v22, 8.507059e+37  ;;  %v323_v45 = vpop.f32.mrf.mxu3 }
  0xa0   :  { %v1882_v16 = vpop.eup %1881 }
  0xa1   :  { %v200_v17 = vmul.f32 %v1882_v16, %v198_v15  ;;  %vm205_vm1 = vweird.f32 %v1882_v16 }
  0xa2   :  { %vm206_vm3 = vmor %vm204_vm2, %vm205_vm1 }
  0xa3   :  { %v201_v18 = vsub.f32 1.0, %v200_v17 }
  0xa5   :  { %v202_v19 = vmul.f32 %v1882_v16, %v201_v18 }
  0xa7   :  { %v203_v20 = vadd.f32 %v1882_v16, %v202_v19 }
  0xa9   :  { %v207_v23 = vsel %vm206_vm3, %v1882_v16, %v203_v20 }
  0xaa   :  { %v212_v26 = vsel %vm209_vm4, %v211_v24, %v207_v23 }
  0xab   :  { %v215_v28 = vmul.f32 0.0, %v212_v26 }
 0x108   :  { %v218_v25 = vpop.permute.xlu0 %217 }
 0x109   :  { %v220_v27 = vmul.f32 %v218_v25, %v212_v26 }
 0x10b   :  { %222 = vrot.lane.b32.xlu0 %v220_v27, %s2068_s18 }
 0x17d   :  { %v223_v29 = vpop.permute.xlu0 %222 }
 0x17e   :  { %v2197_v30 = vadd.f32 %v223_v29, %v215_v28  ;;  %v393_v28 = vsel %vm299_vm15, 1, %v2066_v3 }
 0x180   :  { %1883 = vtanh.f32 %v2197_v30 }
 0x186   :  { %v1884_v31 = vpop.eup %1883 }
 0x187   :  { %228 = vrot.lane.b32.xlu1 %v1884_v31, %s2067_s17 }
 0x18f   :  { %235 = vperm.xlu1 %1870, %v233_v33  }
 0x1f9   :  { %v229_v38 = vpop.permute.xlu1 %228 }
 0x1fa   :  { %v231_v39 = vmul.f32 %v229_v38, %v212_v26 }
 0x201   :  { %v2243_v40 = vpop.permute.xlu1 %235 }
 0x202   :  { %vm237_vm6 = vcmp.eq.s32.totalorder %v2243_v40, 1 }
 0x203   :  { %v2248_v41 = vsel %vm237_vm6, %v231_v39, 0.0  ;;  %v2277_v38 = vsel %vm237_vm6, %v2197_v30, 0.0 }
 0x204   :  { %v241_v42 = vpack.c.bf16 %v2248_v41, %v2248_v41 }
 0x206   :  { %243 = vrot.lane.b32.xlu2 %v241_v42, %s2068_s18 }
 0x260   :  { %v244_v43 = vpop.permute.xlu2 %243 }
 0x261   :  { %1684 = vmatmul.msk.bf16.vlgmr.msra.gmra.mxu2 %vm101_vm0, %v244_v43  ;;  %1702 = vmatmul.msk.bf16.vlgmr.msrb.gmra.mxu1 %vm101_vm0, %v244_v43 }
 0x262   :  { %554 = vmatpush.bf16.msra.mxu2 %v2165_v1  ;;  %626 = vmatpush.bf16.msrb.mxu1 %v2216_v35 }
 0x266   :  { %555 = vmatpush.bf16.msra.mxu2 %v2176_v4  ;;  %627 = vmatpush.bf16.msrb.mxu1 %v2228_v37 }
 0x2de   :  { %v346_v47 = vpop.f32.mrf.mxu1 }
 0x2df   :  { %v347_v48 = vadd.f32 %v346_v47, %v321_v44 }
 0x2e1   :  { %v353_v50 = vadd.f32 %v2262_v46, %v347_v48 }
 0x2e3   :  { %1885 = vtanh.f32 %v353_v50  ;;  %v1703_v58 = vmul.f32 -1.442695, %v353_v50 }
 0x2e4   :  { %v257_v52 = vpop.f32.mrf.mxu2 }
 0x2e5   :  { %v261_v53 = vadd.f32 %v257_v52, %v126_v51 }
 0x2e6   :  { %v348_v54 = vpop.f32.mrf.mxu1 }
 0x2e7   :  { %1887 = vtanh.f32 %v261_v53  ;;  %v1685_v63 = vmul.f32 -1.442695, %v261_v53 }
 0x2e8   :  { %1889 = vpow2.f32 %v1703_v58 }
 0x2e9   :  { %v1886_v55 = vpop.eup %1885 }
 0x2ea   :  { %376 = vrot.lane.b32.xlu2 %v1886_v55, %s2067_s17  ;;  %v1829_v55 = vld [vmem:[%s2811_s30 + $0x8] sm:$0xff] }
 0x2eb   :  { %1672 = vmatmul.msk.bf16.gmra.mxu0 %vm101_vm0, %v1829_v55 }
 0x2ec   :  { %v259_v56 = vpop.f32.mrf.mxu2 }
 0x2ed   :  { %v1888_v57 = vpop.eup %1887 }
 0x2ee   :  { %284 = vrot.lane.b32.xlu0 %v1888_v57, %s2067_s17  ;;  %v1890_v59 = vpop.eup %1889 }
 0x2ef   :  { %v357_v60 = vadd.f32 1.0, %v1890_v59 }
 0x2f1   :  { %1891 = vrcp.f32 %v357_v60  ;;  %v369_v8 = vand.u32 2147483648, %v357_v60  ;;  %vm363_vm8 = vweird.f32 %v357_v60  ;;  %v367_v9 = vand.u32 2147483647, %v357_v60 }
 0x2f2   :  { %1893 = vpow2.f32 %v1685_v63 }
 0x2f3   :  { %v370_v12 = vor.u32 1.1754944e-38, %v369_v8  ;;  %vm368_vm10 = vcmp.eq.f32.partialorder %v367_v9, 8.507059e+37 }
 0x2f7   :  { %v1892_v61 = vpop.eup %1891 }
 0x2f8   :  { %v359_v62 = vmul.f32 %v1892_v61, %v357_v60  ;;  %v1894_v5 = vpop.eup %1893  ;;  %vm364_vm7 = vweird.f32 %v1892_v61 }
 0x2f9   :  { %v265_v10 = vadd.f32 1.0, %v1894_v5  ;;  %vm365_vm9 = vmor %vm363_vm8, %vm364_vm7 }
 0x2fa   :  { %v360_v0 = vsub.f32 1.0, %v359_v62 }
 0x2fb   :  { %1895 = vrcp.f32 %v265_v10  ;;  %v277_v21 = vand.u32 2147483648, %v265_v10  ;;  %vm271_vm12 = vweird.f32 %v265_v10  ;;  %v275_v22 = vand.u32 2147483647, %v265_v10 }
 0x2fc   :  { %v361_v2 = vmul.f32 %v1892_v61, %v360_v0 }
 0x2fd   :  { %v278_v24 = vor.u32 1.1754944e-38, %v277_v21  ;;  %vm276_vm14 = vcmp.eq.f32.partialorder %v275_v22, 8.507059e+37 }
 0x2fe   :  { %v362_v7 = vadd.f32 %v1892_v61, %v361_v2 }
 0x300   :  { %v366_v11 = vsel %vm365_vm9, %v1892_v61, %v362_v7 }
 0x301   :  { %v371_v14 = vsel %vm368_vm10, %v370_v12, %v366_v11  ;;  %v1896_v16 = vpop.eup %1895 }
 0x302   :  { %v267_v17 = vmul.f32 %v1896_v16, %v265_v10  ;;  %vm272_vm11 = vweird.f32 %v1896_v16  ;;  %v374_v29 = vmul.f32 0.0, %v371_v14 }
 0x303   :  { %vm273_vm13 = vmor %vm271_vm12, %vm272_vm11  ;;  %vm459_vm11 = vcmp.gt.s32.totalorder %v2203_v32, 2 }
 0x304   :  { %v268_v18 = vsub.f32 1.0, %v267_v17 }
 0x306   :  { %v269_v19 = vmul.f32 %v1896_v16, %v268_v18 }
 0x308   :  { %v270_v20 = vadd.f32 %v1896_v16, %v269_v19 }
 0x30a   :  { %v274_v23 = vsel %vm273_vm13, %v1896_v16, %v270_v20 }
 0x30b   :  { %v279_v26 = vsel %vm276_vm14, %v278_v24, %v274_v23 }
 0x30c   :  { %v282_v39 = vmul.f32 %v279_v26, %v2277_v38 }
 0x344   :  { %v377_v13 = vpop.permute.xlu2 %376 }
 0x345   :  { %v379_v15 = vmul.f32 %v377_v13, %v371_v14 }
 0x347   :  { %381 = vrot.lane.b32.xlu1 %v379_v15, %s2068_s18 }
 0x360   :  { %v285_v25 = vpop.permute.xlu0 %284 }
 0x361   :  { %v287_v27 = vmul.f32 %v285_v25, %v279_v26 }
 0x363   :  { %289 = vrot.lane.b32.xlu2 %v287_v27, %s2068_s18 }
 0x368   :  { %v128_v58 = vpop.f32.mrf.mxu0 }
 0x369   :  { %v129_v60 = vadd.f32 %v2192_v6, %v128_v58 }
 0x36b   :  { %395 = vperm.xlu2 %1871, %v393_v28  }
 0x3b9   :  { %v382_v31 = vpop.permute.xlu1 %381 }
 0x3ba   :  { %v2272_v33 = vadd.f32 %v382_v31, %v374_v29 }
 0x3bc   :  { %1897 = vtanh.f32 %v2272_v33  ;;  %v2328_v55 = vsel %vm237_vm6, %v2272_v33, 0.0 }
 0x3bd   :  { %v290_v42 = vpop.permute.xlu2 %289 }
 0x3be   :  { %v2281_v43 = vadd.f32 %v290_v42, %v282_v39 }
 0x3c0   :  { %1899 = vtanh.f32 %v2281_v43 }
 0x3c2   :  { %v1898_v44 = vpop.eup %1897 }
 0x3c3   :  { %387 = vrot.lane.b32.xlu0 %v1898_v44, %s2067_s17 }
 0x3c5   :  { %v2286_v49 = vpop.permute.xlu2 %395 }
 0x3c6   :  { %v1900_v45 = vpop.eup %1899  ;;  %vm397_vm1 = vcmp.eq.s32.totalorder %v2286_v49, 1 }
 0x3c7   :  { %295 = vrot.lane.b32.xlu1 %v1900_v45, %s2067_s17  ;;  %v2337_v58 = vsel %vm397_vm1, %v2281_v43, %v2277_v38 }
 0x435   :  { %v388_v47 = vpop.permute.xlu0 %387 }
 0x436   :  { %v390_v48 = vmul.f32 %v388_v47, %v371_v14 }
 0x438   :  { %v2290_v30 = vsel %vm237_vm6, %v390_v48, 0.0 }
 0x439   :  { %v460_v50 = vpack.c.bf16 %v2290_v30, %v2290_v30  ;;  %v296_v51 = vpop.permute.xlu1 %295 }
 0x43a   :  { %v298_v52 = vmul.f32 %v296_v51, %v279_v26 }
 0x43b   :  { %462 = vrot.lane.b32.xlu0 %v460_v50, %s2068_s18 }
 0x43c   :  { %v2299_v53 = vsel %vm397_vm1, %v298_v52, %v2248_v41 }
 0x43d   :  { %v401_v54 = vpack.c.bf16 %v2299_v53, %v2299_v53 }
 0x43f   :  { %403 = vrot.lane.b32.xlu1 %v401_v54, %s2068_s18  ;;  %v533_v54 = vsel %vm459_vm11, 1, %v2066_v3 }
 0x4ad   :  { %v463_v56 = vpop.permute.xlu0 %462 }
 0x4ae   :  { %1706 = vmatmul.msk.bf16.vlgmr.msrb.gmra.mxu3 %vm101_vm0, %v463_v56 }
 0x4af   :  { %753 = vmatpush.bf16.msrb.mxu3 %v2211_v34 }
 0x4b1   :  { %v404_v57 = vpop.permute.xlu1 %403 }
 0x4b2   :  { %1704 = vmatmul.msk.bf16.vlgmr.msrb.gmra.mxu2 %vm101_vm0, %v404_v57  ;;  %1707 = vmatmul.msk.bf16.vlgmr.msra.gmra.mxu1 %vm101_vm0, %v404_v57 }
 0x4b3   :  { %694 = vmatpush.bf16.msrb.mxu2 %v2165_v1  ;;  %754 = vmatpush.bf16.msrb.mxu3 %v2222_v36 }
 0x4b4   :  { %834 = vmatpush.bf16.msra.mxu1 %v2165_v1 }
 0x4b7   :  { %695 = vmatpush.bf16.msrb.mxu2 %v2176_v4 }
 0x4b8   :  { %835 = vmatpush.bf16.msra.mxu1 %v2176_v4 }
 0x52f   :  { %v489_v41 = vpop.f32.mrf.mxu1 }
 0x531   :  { %v476_v59 = vpop.f32.mrf.mxu3 }
 0x532   :  { %v490_v61 = vadd.f32 %v489_v41, %v476_v59 }
 0x534   :  { %v493_v62 = vadd.f32 %v2262_v46, %v490_v61 }
 0x535   :  { %v417_v63 = vpop.f32.mrf.mxu2 }
 0x536   :  { %1901 = vtanh.f32 %v493_v62  ;;  %v421_v0 = vadd.f32 %v417_v63, %v129_v60  ;;  %v1708_v10 = vmul.f32 -1.442695, %v493_v62 }
 0x537   :  { %v491_v2 = vpop.f32.mrf.mxu1 }
 0x538   :  { %1903 = vtanh.f32 %v421_v0  ;;  %v1705_v15 = vmul.f32 -1.442695, %v421_v0 }
 0x539   :  { %v478_v5 = vpop.f32.mrf.mxu3  ;;  %1905 = vpow2.f32 %v1708_v10  ;;  %v130_v10 = vpop.f32.mrf.mxu0 }
 0x53c   :  { %v1902_v7 = vpop.eup %1901 }
 0x53d   :  { %516 = vrot.lane.b32.xlu2 %v1902_v7, %s2067_s17  ;;  %v419_v8 = vpop.f32.mrf.mxu2 }
 0x53e   :  { %v1904_v9 = vpop.eup %1903 }
 0x53f   :  { %444 = vrot.lane.b32.xlu0 %v1904_v9, %s2067_s17  ;;  %v1906_v11 = vpop.eup %1905 }
 0x540   :  { %v497_v12 = vadd.f32 1.0, %v1906_v11 }
 0x542   :  { %1907 = vrcp.f32 %v497_v12  ;;  %v509_v20 = vand.u32 2147483648, %v497_v12  ;;  %vm503_vm3 = vweird.f32 %v497_v12  ;;  %v507_v22 = vand.u32 2147483647, %v497_v12 }
 0x543   :  { %1909 = vpow2.f32 %v1705_v15 }
 0x544   :  { %v510_v24 = vor.u32 1.1754944e-38, %v509_v20  ;;  %vm508_vm5 = vcmp.eq.f32.partialorder %v507_v22, 8.507059e+37 }
 0x548   :  { %v1908_v13 = vpop.eup %1907 }
 0x549   :  { %v499_v14 = vmul.f32 %v1908_v13, %v497_v12  ;;  %v1910_v18 = vpop.eup %1909  ;;  %vm504_vm2 = vweird.f32 %v1908_v13 }
 0x54a   :  { %v425_v21 = vadd.f32 1.0, %v1910_v18  ;;  %vm505_vm4 = vmor %vm503_vm3, %vm504_vm2 }
 0x54b   :  { %v500_v16 = vsub.f32 1.0, %v499_v14 }
 0x54c   :  { %1911 = vrcp.f32 %v425_v21  ;;  %v437_v44 = vand.u32 2147483648, %v425_v21  ;;  %vm431_vm8 = vweird.f32 %v425_v21  ;;  %v435_v45 = vand.u32 2147483647, %v425_v21 }
 0x54d   :  { %v501_v17 = vmul.f32 %v1908_v13, %v500_v16 }
 0x54e   :  { %v438_v48 = vor.u32 1.1754944e-38, %v437_v44  ;;  %vm436_vm10 = vcmp.eq.f32.partialorder %v435_v45, 8.507059e+37 }
 0x54f   :  { %v502_v19 = vadd.f32 %v1908_v13, %v501_v17 }
 0x551   :  { %v506_v23 = vsel %vm505_vm4, %v1908_v13, %v502_v19  ;;  %v131_v13 = vadd.f32 %v2192_v6, %v130_v10 }
 0x552   :  { %v511_v26 = vsel %vm508_vm5, %v510_v24, %v506_v23  ;;  %v1912_v28 = vpop.eup %1911 }
 0x553   :  { %v427_v29 = vmul.f32 %v1912_v28, %v425_v21  ;;  %vm432_vm7 = vweird.f32 %v1912_v28  ;;  %v514_v56 = vmul.f32 %v511_v26, %v2328_v55 }
 0x554   :  { %vm433_vm9 = vmor %vm431_vm8, %vm432_vm7  ;;  %vm599_vm7 = vcmp.gt.s32.totalorder %v2203_v32, 3 }
 0x555   :  { %v428_v31 = vsub.f32 1.0, %v427_v29 }
 0x557   :  { %v429_v39 = vmul.f32 %v1912_v28, %v428_v31 }
 0x559   :  { %v430_v42 = vadd.f32 %v1912_v28, %v429_v39 }
 0x55b   :  { %v434_v47 = vsel %vm433_vm9, %v1912_v28, %v430_v42 }
 0x55c   :  { %v439_v51 = vsel %vm436_vm10, %v438_v48, %v434_v47 }
 0x55d   :  { %v442_v59 = vmul.f32 %v439_v51, %v2337_v58 }
 0x597   :  { %v517_v25 = vpop.permute.xlu2 %516 }
 0x598   :  { %v519_v27 = vmul.f32 %v517_v25, %v511_v26 }
 0x59a   :  { %521 = vrot.lane.b32.xlu1 %v519_v27, %s2068_s18 }
 0x5b1   :  { %v445_v50 = vpop.permute.xlu0 %444 }
 0x5b2   :  { %v447_v52 = vmul.f32 %v445_v50, %v439_v51 }
 0x5b4   :  { %449 = vrot.lane.b32.xlu2 %v447_v52, %s2068_s18 }
 0x5bc   :  { %535 = vperm.xlu2 %1871, %v533_v54  }
 0x60c   :  { %v522_v57 = vpop.permute.xlu1 %521 }
 0x60d   :  { %v2331_v41 = vadd.f32 %v522_v57, %v514_v56 }
 0x60e   :  { %v450_v60 = vpop.permute.xlu2 %449 }
 0x60f   :  { %1913 = vtanh.f32 %v2331_v41  ;;  %v2341_v61 = vadd.f32 %v450_v60, %v442_v59 }
 0x611   :  { %1915 = vtanh.f32 %v2341_v61 }
 0x615   :  { %v1914_v40 = vpop.eup %1913 }
 0x616   :  { %527 = vrot.lane.b32.xlu0 %v1914_v40, %s2067_s17  ;;  %v2346_v0 = vpop.permute.xlu2 %535 }
 0x617   :  { %v1916_v33 = vpop.eup %1915  ;;  %vm537_vm6 = vcmp.eq.s32.totalorder %v2346_v0, 1 }
 0x618   :  { %455 = vrot.lane.b32.xlu1 %v1916_v33, %s2067_s17 }
 0x688   :  { %v528_v62 = vpop.permute.xlu0 %527 }
 0x689   :  { %v530_v63 = vmul.f32 %v528_v62, %v511_v26 }
 0x68a   :  { %v456_v38 = vpop.permute.xlu1 %455 }
 0x68b   :  { %v2351_v43 = vsel %vm397_vm1, %v530_v63, %v2290_v30  ;;  %v458_v2 = vmul.f32 %v456_v38, %v439_v51 }
 0x68c   :  { %v600_v5 = vpack.c.bf16 %v2351_v43, %v2351_v43 }
 0x68d   :  { %v2360_v7 = vsel %vm537_vm6, %v458_v2, %v2299_v53 }
 0x68e   :  { %602 = vrot.lane.b32.xlu0 %v600_v5, %s2068_s18  ;;  %v541_v8 = vpack.c.bf16 %v2360_v7, %v2360_v7 }
 0x690   :  { %543 = vrot.lane.b32.xlu1 %v541_v8, %s2068_s18  ;;  %v673_v8 = vsel %vm599_vm7, 1, %v2066_v3 }
 0x700   :  { %v603_v30 = vpop.permute.xlu0 %602 }
 0x701   :  { %1711 = vmatmul.msk.bf16.vlgmr.msra.gmra.mxu3 %vm101_vm0, %v603_v30  ;;  %v2386_v30 = vsel %vm397_vm1, %v2331_v41, %v2328_v55  ;;  %v1830_v41 = vld [vmem:[%s2811_s30 + $0x10] sm:$0xff] }
 0x702   :  { %906 = vmatpush.bf16.msra.mxu3 %v2216_v35  ;;  %v544_v9 = vpop.permute.xlu1 %543  ;;  %1673 = vmatmul.msk.bf16.gmra.mxu0 %vm101_vm0, %v1830_v41 }
 0x703   :  { %1709 = vmatmul.msk.bf16.vlgmr.msra.gmra.mxu2 %vm101_vm0, %v544_v9  ;;  %1712 = vmatmul.msk.bf16.vlgmr.msrb.gmra.mxu1 %vm101_vm0, %v544_v9 }
 0x704   :  { %893 = vmatpush.bf16.msra.mxu2 %v2211_v34  ;;  %1033 = vmatpush.bf16.msrb.mxu1 %v2211_v34 }
 0x706   :  { %907 = vmatpush.bf16.msra.mxu3 %v2228_v37 }
 0x708   :  { %894 = vmatpush.bf16.msra.mxu2 %v2222_v36  ;;  %1034 = vmatpush.bf16.msrb.mxu1 %v2222_v36 }
 0x780   :  { %v629_v53 = vpop.f32.mrf.mxu1 }
 0x784   :  { %v616_v11 = vpop.f32.mrf.mxu3 }
 0x785   :  { %v630_v12 = vadd.f32 %v629_v53, %v616_v11  ;;  %v2393_v53 = vsel %vm537_vm6, %v2341_v61, %v2337_v58  ;;  %v1831_v58 = vld [vmem:[%s2811_s30 + $0x18] sm:$0xff]  ;;  %s1626_s30 = sshll.u32 %s2073_s20, 4  ;;  %s1627_s30 = int_to_ptr.vmem [resolvable:$true] %s1626_s30 }
 0x786   :  { %v557_v15 = vpop.f32.mrf.mxu2  ;;  %1674 = vmatmul.msk.bf16.gmra.mxu0 %vm101_vm0, %v1831_v58 }
 0x787   :  { %v633_v14 = vadd.f32 %v2262_v46, %v630_v12  ;;  %v561_v16 = vadd.f32 %v557_v15, %v131_v13 }
 0x788   :  { %v631_v17 = vpop.f32.mrf.mxu1 }
 0x789   :  { %1917 = vtanh.f32 %v633_v14  ;;  %v1713_v22 = vmul.f32 -1.442695, %v633_v14  ;;  %v1710_v26 = vmul.f32 -1.442695, %v561_v16 }
 0x78a   :  { %1919 = vtanh.f32 %v561_v16 }
 0x78b   :  { %1921 = vpow2.f32 %v1713_v22 }
 0x78c   :  { %v618_v18 = vpop.f32.mrf.mxu3 }
 0x78e   :  { %v559_v20 = vpop.f32.mrf.mxu2 }
 0x78f   :  { %v1918_v19 = vpop.eup %1917 }
 0x790   :  { %v1920_v21 = vpop.eup %1919  ;;  %656 = vrot.lane.b32.xlu2 %v1918_v19, %s2067_s17 }
 0x791   :  { %584 = vrot.lane.b32.xlu0 %v1920_v21, %s2067_s17  ;;  %v1922_v23 = vpop.eup %1921 }
 0x792   :  { %v637_v24 = vadd.f32 1.0, %v1922_v23 }
 0x794   :  { %1923 = vrcp.f32 %v637_v24  ;;  %v649_v44 = vand.u32 2147483648, %v637_v24  ;;  %vm643_vm13 = vweird.f32 %v637_v24  ;;  %v647_v45 = vand.u32 2147483647, %v637_v24 }
 0x795   :  { %1925 = vpow2.f32 %v1710_v26 }
 0x796   :  { %v650_v48 = vor.u32 1.1754944e-38, %v649_v44  ;;  %vm648_vm15 = vcmp.eq.f32.partialorder %v647_v45, 8.507059e+37 }
 0x79a   :  { %v1924_v25 = vpop.eup %1923 }
 0x79b   :  { %v639_v27 = vmul.f32 %v1924_v25, %v637_v24  ;;  %v1926_v31 = vpop.eup %1925  ;;  %vm644_vm12 = vweird.f32 %v1924_v25 }
 0x79c   :  { %v565_v39 = vadd.f32 1.0, %v1926_v31  ;;  %vm645_vm14 = vmor %vm643_vm13, %vm644_vm12 }
 0x79d   :  { %v640_v28 = vsub.f32 1.0, %v639_v27 }
 0x79e   :  { %1927 = vrcp.f32 %v565_v39  ;;  %v577_v40 = vand.u32 2147483648, %v565_v39  ;;  %vm571_vm3 = vweird.f32 %v565_v39  ;;  %v575_v33 = vand.u32 2147483647, %v565_v39 }
 0x79f   :  { %v641_v29 = vmul.f32 %v1924_v25, %v640_v28 }
 0x7a0   :  { %v578_v63 = vor.u32 1.1754944e-38, %v577_v40  ;;  %vm576_vm5 = vcmp.eq.f32.partialorder %v575_v33, 8.507059e+37 }
 0x7a1   :  { %v642_v42 = vadd.f32 %v1924_v25, %v641_v29 }
 0x7a3   :  { %v646_v47 = vsel %vm645_vm14, %v1924_v25, %v642_v42 }
 0x7a4   :  { %v651_v51 = vsel %vm648_vm15, %v650_v48, %v646_v47  ;;  %v1928_v54 = vpop.eup %1927 }
 0x7a5   :  { %v567_v56 = vmul.f32 %v1928_v54, %v565_v39  ;;  %vm572_vm2 = vweird.f32 %v1928_v54  ;;  %v654_v9 = vmul.f32 %v651_v51, %v2386_v30 }
 0x7a6   :  { %vm573_vm4 = vmor %vm571_vm3, %vm572_vm2  ;;  %vm739_vm2 = vcmp.gt.s32.totalorder %v2203_v32, 4 }
 0x7a7   :  { %v568_v57 = vsub.f32 1.0, %v567_v56 }
 0x7a9   :  { %v569_v59 = vmul.f32 %v1928_v54, %v568_v57 }
 0x7ab   :  { %v570_v60 = vadd.f32 %v1928_v54, %v569_v59 }
 0x7ad   :  { %v574_v62 = vsel %vm573_vm4, %v1928_v54, %v570_v60 }
 0x7ae   :  { %v579_v2 = vsel %vm576_vm5, %v578_v63, %v574_v62 }
 0x7af   :  { %v582_v11 = vmul.f32 %v579_v2, %v2393_v53 }
 0x7ea   :  { %v657_v50 = vpop.permute.xlu2 %656 }
 0x7eb   :  { %v659_v52 = vmul.f32 %v657_v50, %v651_v51 }
 0x7ed   :  { %661 = vrot.lane.b32.xlu1 %v659_v52, %s2068_s18 }
 0x803   :  { %v585_v38 = vpop.permute.xlu0 %584 }
 0x804   :  { %v587_v5 = vmul.f32 %v585_v38, %v579_v2 }
 0x806   :  { %589 = vrot.lane.b32.xlu2 %v587_v5, %s2068_s18 }
 0x80e   :  { %675 = vperm.xlu2 %1871, %v673_v8  }
 0x85f   :  { %v662_v10 = vpop.permute.xlu1 %661 }
 0x860   :  { %v2396_v12 = vadd.f32 %v662_v10, %v654_v9  ;;  %v590_v13 = vpop.permute.xlu2 %589 }
 0x861   :  { %v2398_v14 = vadd.f32 %v590_v13, %v582_v11 }
 0x862   :  { %1929 = vtanh.f32 %v2396_v12 }
 0x863   :  { %1931 = vtanh.f32 %v2398_v14 }
 0x868   :  { %v1930_v49 = vpop.eup %1929  ;;  %v2412_v61 = vpop.permute.xlu2 %675 }
 0x869   :  { %v1932_v55 = vpop.eup %1931  ;;  %667 = vrot.lane.b32.xlu0 %v1930_v49, %s2067_s17  ;;  %vm677_vm1 = vcmp.eq.s32.totalorder %v2412_v61, 1 }
 0x86a   :  { %595 = vrot.lane.b32.xlu1 %v1932_v55, %s2067_s17 }
 0x8db   :  { %v668_v15 = vpop.permute.xlu0 %667 }
 0x8dc   :  { %v670_v16 = vmul.f32 %v668_v15, %v651_v51  ;;  %v596_v17 = vpop.permute.xlu1 %595 }
 0x8dd   :  { %v598_v18 = vmul.f32 %v596_v17, %v579_v2 }
 0x8de   :  { %v2418_v19 = vsel %vm537_vm6, %v670_v16, %v2351_v43  ;;  %v133_v43 = vpop.f32.mrf.mxu0 }
 0x8df   :  { %v740_v20 = vpack.c.bf16 %v2418_v19, %v2418_v19  ;;  %v2425_v21 = vsel %vm677_vm1, %v598_v18, %v2360_v7  ;;  %v134_v28 = vadd.f32 %v2192_v6, %v133_v43 }
 0x8e0   :  { %v681_v22 = vpack.c.bf16 %v2425_v21, %v2425_v21 }
 0x8e1   :  { %742 = vrot.lane.b32.xlu0 %v740_v20, %s2068_s18 }
 0x8e2   :  { %683 = vrot.lane.b32.xlu1 %v681_v22, %s2068_s18 }
 0x8e6   :  { %v2440_v7 = vpop.f32.mrf.mxu0 }
 0x8ee   :  { %v2442_v25 = vpop.f32.mrf.mxu0 }
 0x8f6   :  { %v2444_v26 = vpop.f32.mrf.mxu0 }
 0x953   :  { %v743_v23 = vpop.permute.xlu0 %742 }
 0x954   :  { %v684_v24 = vpop.permute.xlu1 %683  ;;  %1716 = vmatmul.msk.bf16.vlgmr.msrb.gmra.mxu3 %vm101_vm0, %v743_v23  ;;  %v813_v23 = vsel %vm739_vm2, 1, %v2066_v3 }
 0x955   :  { %1714 = vmatmul.msk.bf16.vlgmr.msrb.gmra.mxu2 %vm101_vm0, %v684_v24  ;;  %1717 = vmatmul.msk.bf16.vlgmr.msrb.gmra.mxu0 %vm101_vm0, %v684_v24  ;;  %v2458_v24 = vsel %vm677_vm1, %v2398_v14, %v2393_v53 }
 0x956   :  { %1046 = vmatpush.bf16.msrb.mxu2 %v2216_v35  ;;  %1173 = vmatpush.bf16.msrb.mxu0 %v2211_v34 }
 0x957   :  { %1114 = vmatpush.bf16.msrb.mxu3 %v2165_v1 }
 0x95a   :  { %1047 = vmatpush.bf16.msrb.mxu2 %v2228_v37  ;;  %1174 = vmatpush.bf16.msrb.mxu0 %v2222_v36 }
 0x95b   :  { %1115 = vmatpush.bf16.msrb.mxu3 %v2176_v4 }
 0x9d2   :  { %v769_v27 = vpop.f32.mrf.mxu0 }
 0x9d7   :  { %v756_v29 = vpop.f32.mrf.mxu3 }
 0x9d8   :  { %v697_v31 = vpop.f32.mrf.mxu2  ;;  %v770_v39 = vadd.f32 %v769_v27, %v756_v29  ;;  %v2465_v27 = vsel %vm537_vm6, %v2396_v12, %v2386_v30 }
 0x9d9   :  { %v701_v1 = vadd.f32 %v697_v31, %v134_v28 }
 0x9da   :  { %v773_v42 = vadd.f32 %v2262_v46, %v770_v39  ;;  %v771_v44 = vpop.f32.mrf.mxu0 }
 0x9db   :  { %1933 = vtanh.f32 %v701_v1  ;;  %v1715_v50 = vmul.f32 -1.442695, %v701_v1 }
 0x9dc   :  { %1935 = vtanh.f32 %v773_v42  ;;  %v1718_v56 = vmul.f32 -1.442695, %v773_v42 }
 0x9dd   :  { %1937 = vpow2.f32 %v1715_v50 }
 0x9df   :  { %v758_v4 = vpop.f32.mrf.mxu3 }
 0x9e0   :  { %v699_v45 = vpop.f32.mrf.mxu2 }
 0x9e1   :  { %v1934_v47 = vpop.eup %1933 }
 0x9e2   :  { %v1936_v48 = vpop.eup %1935  ;;  %724 = vrot.lane.b32.xlu2 %v1934_v47, %s2067_s17 }
 0x9e3   :  { %796 = vrot.lane.b32.xlu0 %v1936_v48, %s2067_s17  ;;  %v1938_v51 = vpop.eup %1937 }
 0x9e4   :  { %v705_v52 = vadd.f32 1.0, %v1938_v51 }
 0x9e6   :  { %1939 = vrcp.f32 %v705_v52  ;;  %v717_v63 = vand.u32 2147483648, %v705_v52  ;;  %vm711_vm9 = vweird.f32 %v705_v52  ;;  %v715_v38 = vand.u32 2147483647, %v705_v52 }
 0x9e7   :  { %1941 = vpow2.f32 %v1718_v56 }
 0x9e8   :  { %v718_v5 = vor.u32 1.1754944e-38, %v717_v63  ;;  %vm716_vm11 = vcmp.eq.f32.partialorder %v715_v38, 8.507059e+37 }
 0x9ec   :  { %v1940_v54 = vpop.eup %1939 }
 0x9ed   :  { %v707_v57 = vmul.f32 %v1940_v54, %v705_v52  ;;  %v1942_v40 = vpop.eup %1941  ;;  %vm712_vm8 = vweird.f32 %v1940_v54 }
 0x9ee   :  { %v777_v33 = vadd.f32 1.0, %v1942_v40  ;;  %vm713_vm10 = vmor %vm711_vm9, %vm712_vm8  ;;  %vm879_vm8 = vcmp.gt.s32.totalorder %v2203_v32, 5 }
 0x9ef   :  { %v708_v59 = vsub.f32 1.0, %v707_v57 }
 0x9f0   :  { %1943 = vrcp.f32 %v777_v33  ;;  %v789_v58 = vand.u32 2147483648, %v777_v33  ;;  %vm783_vm13 = vweird.f32 %v777_v33  ;;  %v787_v15 = vand.u32 2147483647, %v777_v33 }
 0x9f1   :  { %v709_v60 = vmul.f32 %v1940_v54, %v708_v59 }
 0x9f2   :  { %v790_v17 = vor.u32 1.1754944e-38, %v789_v58  ;;  %vm788_vm15 = vcmp.eq.f32.partialorder %v787_v15, 8.507059e+37  ;;  %v953_v58 = vsel %vm879_vm8, 1, %v2066_v3 }
 0x9f3   :  { %v710_v62 = vadd.f32 %v1940_v54, %v709_v60 }
 0x9f5   :  { %v714_v2 = vsel %vm713_vm10, %v1940_v54, %v710_v62 }
 0x9f6   :  { %v719_v9 = vsel %vm716_vm11, %v718_v5, %v714_v2  ;;  %v1944_v11 = vpop.eup %1943 }
 0x9f7   :  { %v779_v13 = vmul.f32 %v1944_v11, %v777_v33  ;;  %vm784_vm12 = vweird.f32 %v1944_v11  ;;  %v722_v43 = vmul.f32 %v719_v9, %v2458_v24 }
 0x9f8   :  { %vm785_vm14 = vmor %vm783_vm13, %vm784_vm12 }
 0x9f9   :  { %v780_v49 = vsub.f32 1.0, %v779_v13 }
 0x9fb   :  { %v781_v55 = vmul.f32 %v1944_v11, %v780_v49 }
 0x9fd   :  { %v782_v41 = vadd.f32 %v1944_v11, %v781_v55 }
 0x9ff   :  { %v786_v16 = vsel %vm785_vm14, %v1944_v11, %v782_v41 }
 0xa00   :  { %v791_v20 = vsel %vm788_vm15, %v790_v17, %v786_v16 }
 0xa01   :  { %v794_v29 = vmul.f32 %v791_v20, %v2465_v27 }
 0xa3c   :  { %v725_v8 = vpop.permute.xlu2 %724 }
 0xa3d   :  { %v727_v10 = vmul.f32 %v725_v8, %v719_v9 }
 0xa3f   :  { %729 = vrot.lane.b32.xlu1 %v727_v10, %s2068_s18 }
 0xa55   :  { %v797_v18 = vpop.permute.xlu0 %796 }
 0xa56   :  { %v799_v22 = vmul.f32 %v797_v18, %v791_v20 }
 0xa58   :  { %801 = vrot.lane.b32.xlu2 %v799_v22, %s2068_s18 }
 0xa60   :  { %815 = vperm.xlu2 %1871, %v813_v23  }
 0xab1   :  { %v730_v28 = vpop.permute.xlu1 %729 }
 0xab2   :  { %v2468_v31 = vadd.f32 %v730_v28, %v722_v43  ;;  %v802_v39 = vpop.permute.xlu2 %801 }
 0xab3   :  { %v2470_v1 = vadd.f32 %v802_v39, %v794_v29 }
 0xab4   :  { %1945 = vtanh.f32 %v2468_v31 }
 0xab5   :  { %1947 = vtanh.f32 %v2470_v1 }
 0xaba   :  { %v1946_v53 = vpop.eup %1945  ;;  %v2476_v0 = vpop.permute.xlu2 %815 }
 0xabb   :  { %v1948_v14 = vpop.eup %1947  ;;  %735 = vrot.lane.b32.xlu0 %v1946_v53, %s2067_s17  ;;  %vm817_vm6 = vcmp.eq.s32.totalorder %v2476_v0, 1 }
 0xabc   :  { %807 = vrot.lane.b32.xlu1 %v1948_v14, %s2067_s17  ;;  %v2517_v32 = vsel %vm817_vm6, %v2468_v31, %v2458_v24 }
 0xb2d   :  { %v736_v30 = vpop.permute.xlu0 %735 }
 0xb2e   :  { %v738_v12 = vmul.f32 %v736_v30, %v719_v9  ;;  %v808_v42 = vpop.permute.xlu1 %807 }
 0xb2f   :  { %v810_v44 = vmul.f32 %v808_v42, %v791_v20  ;;  %v2527_v42 = vsel %vm677_vm1, %v2470_v1, %v2465_v27 }
 0xb30   :  { %v2482_v4 = vsel %vm817_vm6, %v738_v12, %v2425_v21 }
 0xb31   :  { %v821_v45 = vpack.c.bf16 %v2482_v4, %v2482_v4  ;;  %v2489_v47 = vsel %vm677_vm1, %v810_v44, %v2418_v19  ;;  %v136_v19 = vadd.f32 %v2192_v6, %v2440_v7 }
 0xb32   :  { %v880_v48 = vpack.c.bf16 %v2489_v47, %v2489_v47 }
 0xb33   :  { %823 = vrot.lane.b32.xlu0 %v821_v45, %s2068_s18 }
 0xb34   :  { %882 = vrot.lane.b32.xlu1 %v880_v48, %s2068_s18 }
 0xba5   :  { %v824_v50 = vpop.permute.xlu0 %823 }
 0xba6   :  { %1719 = vmatmul.msk.bf16.vlgmr.msra.gmra.mxu1 %vm101_vm0, %v824_v50  ;;  %1722 = vmatmul.msk.bf16.vlgmr.msra.gmra.mxu3 %vm101_vm0, %v824_v50  ;;  %v883_v21 = vpop.permute.xlu1 %882 }
 0xba7   :  { %1721 = vmatmul.msk.bf16.vlgmr.msra.gmra.mxu2 %vm101_vm0, %v883_v21  ;;  %1186 = vmatpush.bf16.msra.mxu1 %v2216_v35 }
 0xba8   :  { %1254 = vmatpush.bf16.msra.mxu2 %v2211_v34  ;;  %1273 = vmatpush.bf16.msra.mxu3 %v2216_v35 }
 0xbab   :  { %1187 = vmatpush.bf16.msra.mxu1 %v2228_v37 }
 0xbac   :  { %1255 = vmatpush.bf16.msra.mxu2 %v2222_v36  ;;  %1274 = vmatpush.bf16.msra.mxu3 %v2228_v37 }
 0xc23   :  { %v837_v51 = vpop.f32.mrf.mxu1 }
 0xc24   :  { %v841_v52 = vadd.f32 %v837_v51, %v136_v19 }
 0xc26   :  { %1949 = vtanh.f32 %v841_v52  ;;  %v1720_v37 = vmul.f32 -1.442695, %v841_v52 }
 0xc29   :  { %v909_v54 = vpop.f32.mrf.mxu3 }
 0xc2a   :  { %v896_v56 = vpop.f32.mrf.mxu2 }
 0xc2b   :  { %v839_v57 = vpop.f32.mrf.mxu1  ;;  %v910_v59 = vadd.f32 %v909_v54, %v896_v56 }
 0xc2c   :  { %v1950_v60 = vpop.eup %1949 }
 0xc2d   :  { %v913_v34 = vadd.f32 %v2262_v46, %v910_v59  ;;  %864 = vrot.lane.b32.xlu2 %v1950_v60, %s2067_s17 }
 0xc2f   :  { %1951 = vtanh.f32 %v913_v34  ;;  %v1723_v38 = vmul.f32 -1.442695, %v913_v34 }
 0xc30   :  { %1953 = vpow2.f32 %v1720_v37 }
 0xc31   :  { %v911_v35 = vpop.f32.mrf.mxu3 }
 0xc32   :  { %v898_v36 = vpop.f32.mrf.mxu2 }
 0xc35   :  { %v1952_v40 = vpop.eup %1951 }
 0xc36   :  { %936 = vrot.lane.b32.xlu0 %v1952_v40, %s2067_s17  ;;  %v1954_v6 = vpop.eup %1953 }
 0xc37   :  { %v845_v7 = vadd.f32 1.0, %v1954_v6 }
 0xc39   :  { %1955 = vrcp.f32 %v845_v7  ;;  %v857_v5 = vand.u32 2147483648, %v845_v7  ;;  %vm851_vm4 = vweird.f32 %v845_v7  ;;  %v855_v8 = vand.u32 2147483647, %v845_v7 }
 0xc3a   :  { %1957 = vpow2.f32 %v1723_v38 }
 0xc3b   :  { %v858_v11 = vor.u32 1.1754944e-38, %v857_v5  ;;  %vm856_vm7 = vcmp.eq.f32.partialorder %v855_v8, 8.507059e+37 }
 0xc3f   :  { %v1956_v33 = vpop.eup %1955 }
 0xc40   :  { %v847_v62 = vmul.f32 %v1956_v33, %v845_v7  ;;  %vm852_vm3 = vweird.f32 %v1956_v33  ;;  %v1958_v10 = vpop.eup %1957  ;;  %v2567_v7 = vld [vmem:[%s2799_s7] ss:$0 sm:$0xff] }
 0xc41   :  { %vm853_vm5 = vmor %vm851_vm4, %vm852_vm3  ;;  %v917_v55 = vadd.f32 1.0, %v1958_v10 }
 0xc42   :  { %v848_v63 = vsub.f32 1.0, %v847_v62 }
 0xc43   :  { %1959 = vrcp.f32 %v917_v55  ;;  %v929_v22 = vand.u32 2147483648, %v917_v55  ;;  %vm923_vm10 = vweird.f32 %v917_v55  ;;  %v927_v23 = vand.u32 2147483647, %v917_v55 }
 0xc44   :  { %v849_v2 = vmul.f32 %v1956_v33, %v848_v63 }
 0xc45   :  { %v930_v28 = vor.u32 1.1754944e-38, %v929_v22  ;;  %vm928_vm12 = vcmp.eq.f32.partialorder %v927_v23, 8.507059e+37 }
 0xc46   :  { %v850_v46 = vadd.f32 %v1956_v33, %v849_v2 }
 0xc48   :  { %v854_v9 = vsel %vm853_vm5, %v1956_v33, %v850_v46 }
 0xc49   :  { %v859_v49 = vsel %vm856_vm7, %v858_v11, %v854_v9  ;;  %v1960_v15 = vpop.eup %1959 }
 0xc4a   :  { %v919_v16 = vmul.f32 %v1960_v15, %v917_v55  ;;  %vm924_vm9 = vweird.f32 %v1960_v15  ;;  %v862_v14 = vmul.f32 %v859_v49, %v2517_v32 }
 0xc4b   :  { %vm925_vm11 = vmor %vm923_vm10, %vm924_vm9 }
 0xc4c   :  { %v920_v17 = vsub.f32 1.0, %v919_v16 }
 0xc4e   :  { %v921_v18 = vmul.f32 %v1960_v15, %v920_v17 }
 0xc50   :  { %v922_v20 = vadd.f32 %v1960_v15, %v921_v18 }
 0xc52   :  { %v926_v43 = vsel %vm925_vm11, %v1960_v15, %v922_v20  ;;  %v2576_v20 = vld [vmem:[%s2793_s1] sm:$0xff]  ;;  %s2069_s1 = smov 96  }
 0xc53   :  { %v931_v39 = vsel %vm928_vm12, %v930_v28, %v926_v43  ;;  %vm1019_vm3 = vcmp.gt.s32.totalorder %v2576_v20, 6 }
 0xc54   :  { %v934_v44 = vmul.f32 %v931_v39, %v2527_v42  ;;  %v1093_v22 = vsel %vm1019_vm3, 1, %v2066_v3  ;;  %vm1159_vm3 = vcmp.gt.s32.totalorder %v2576_v20, 7 }
 0xc87   :  { %v865_v13 = vpop.permute.xlu2 %864 }
 0xc88   :  { %v867_v41 = vmul.f32 %v865_v13, %v859_v49 }
 0xc8a   :  { %869 = vrot.lane.b32.xlu1 %v867_v41, %s2068_s18 }
 0xc92   :  { %955 = vperm.xlu1 %1870, %v953_v58  }
 0xca8   :  { %v937_v29 = vpop.permute.xlu0 %936 }
 0xca9   :  { %v939_v53 = vmul.f32 %v937_v29, %v931_v39 }
 0xcab   :  { %941 = vrot.lane.b32.xlu2 %v939_v53, %s2068_s18 }
 0xcfc   :  { %v870_v30 = vpop.permute.xlu1 %869 }
 0xcfd   :  { %v2520_v12 = vadd.f32 %v870_v30, %v862_v14 }
 0xcff   :  { %1961 = vtanh.f32 %v2520_v12 }
 0xd04   :  { %v2543_v1 = vpop.permute.xlu1 %955 }
 0xd05   :  { %v1962_v45 = vpop.eup %1961  ;;  %v942_v48 = vpop.permute.xlu2 %941  ;;  %vm957_vm1 = vcmp.eq.s32.totalorder %v2543_v1, 1 }
 0xd06   :  { %875 = vrot.lane.b32.xlu0 %v1962_v45, %s2067_s17  ;;  %v2531_v24 = vadd.f32 %v942_v48, %v934_v44 }
 0xd08   :  { %1963 = vtanh.f32 %v2531_v24 }
 0xd0e   :  { %v1964_v31 = vpop.eup %1963 }
 0xd0f   :  { %947 = vrot.lane.b32.xlu2 %v1964_v31, %s2067_s17 }
 0xd69   :  { %v948_v50 = vpop.permute.xlu2 %947 }
 0xd6a   :  { %v950_v21 = vmul.f32 %v948_v50, %v931_v39  ;;  %v2585_v50 = vsel %vm957_vm1, %v2520_v12, %v2517_v32 }
 0xd6c   :  { %v2538_v61 = vsel %vm817_vm6, %v950_v21, %v2489_v47 }
 0xd6d   :  { %v1020_v27 = vpack.c.bf16 %v2538_v61, %v2538_v61 }
 0xd6f   :  { %1022 = vrot.lane.b32.xlu1 %v1020_v27, %s2068_s18 }
 0xd78   :  { %v876_v19 = vpop.permute.xlu0 %875 }
 0xd79   :  { %v878_v51 = vmul.f32 %v876_v19, %v859_v49 }
 0xd7b   :  { %v2549_v52 = vsel %vm957_vm1, %v878_v51, %v2482_v4  ;;  %v2560_v4 = vld [vmem:[%s2796_s4] ss:$0 sm:$0xff]  ;;  %v2595_v51 = vsel %vm817_vm6, %v2531_v24, %v2527_v42 }
 0xd7c   :  { %v961_v47 = vpack.c.bf16 %v2549_v52, %v2549_v52  ;;  %v139_v60 = vadd.f32 %v2560_v4, %v2442_v25 }
 0xd7e   :  { %963 = vrot.lane.b32.xlu0 %v961_v47, %s2068_s18 }
 0xde1   :  { %v1023_v54 = vpop.permute.xlu1 %1022 }
 0xde2   :  { %1726 = vmatmul.msk.bf16.vlgmr.msrb.gmra.mxu1 %vm101_vm0, %v1023_v54 }
 0xdf0   :  { %v964_v56 = vpop.permute.xlu0 %963 }
 0xdf1   :  { %1724 = vmatmul.msk.bf16.vlgmr.msra.gmra.mxu0 %vm101_vm0, %v964_v56  ;;  %1727 = vmatmul.msk.bf16.vlgmr.msrb.gmra.mxu2 %vm101_vm0, %v964_v56 }
 0xe5f   :  { %v1036_v57 = vpop.f32.mrf.mxu1 }
 0xe67   :  { %v1038_v59 = vpop.f32.mrf.mxu1 }
 0xe6e   :  { %v977_v34 = vpop.f32.mrf.mxu0 }
 0xe6f   :  { %v981_v35 = vadd.f32 %v977_v34, %v139_v60 }
 0xe71   :  { %1965 = vtanh.f32 %v981_v35  ;;  %v1725_v25 = vmul.f32 -1.442695, %v981_v35 }
 0xe74   :  { %v1049_v36 = vpop.f32.mrf.mxu2 }
 0xe75   :  { %v1050_v40 = vadd.f32 %v1049_v36, %v1036_v57 }
 0xe76   :  { %v979_v37 = vpop.f32.mrf.mxu0 }
 0xe77   :  { %v1966_v6 = vpop.eup %1965  ;;  %v1053_v33 = vadd.f32 %v2567_v7, %v1050_v40 }
 0xe78   :  { %1004 = vrot.lane.b32.xlu2 %v1966_v6, %s2067_s17 }
 0xe79   :  { %1967 = vtanh.f32 %v1053_v33  ;;  %v1728_v9 = vmul.f32 -1.442695, %v1053_v33 }
 0xe7a   :  { %1969 = vpow2.f32 %v1725_v25 }
 0xe7c   :  { %v1051_v62 = vpop.f32.mrf.mxu2 }
 0xe7f   :  { %v1968_v63 = vpop.eup %1967 }
 0xe80   :  { %1076 = vrot.lane.b32.xlu0 %v1968_v63, %s2067_s17  ;;  %v1970_v38 = vpop.eup %1969  ;;  %v141_v63 = vadd.f32 %v2560_v4, %v2444_v26 }
 0xe81   :  { %v985_v2 = vadd.f32 1.0, %v1970_v38 }
 0xe83   :  { %1971 = vrcp.f32 %v985_v2  ;;  %v997_v13 = vand.u32 2147483648, %v985_v2  ;;  %vm991_vm14 = vweird.f32 %v985_v2  ;;  %v995_v49 = vand.u32 2147483647, %v985_v2 }
 0xe84   :  { %1973 = vpow2.f32 %v1728_v9 }
 0xe85   :  { %v998_v58 = vor.u32 1.1754944e-38, %v997_v13  ;;  %vm996_vm2 = vcmp.eq.f32.partialorder %v995_v49, 8.507059e+37 }
 0xe89   :  { %v1972_v46 = vpop.eup %1971 }
 0xe8a   :  { %v987_v5 = vmul.f32 %v1972_v46, %v985_v2  ;;  %vm992_vm13 = vweird.f32 %v1972_v46  ;;  %v1974_v55 = vpop.eup %1973 }
 0xe8b   :  { %vm993_vm15 = vmor %vm991_vm14, %vm992_vm13  ;;  %v1057_v15 = vadd.f32 1.0, %v1974_v55 }
 0xe8c   :  { %v988_v8 = vsub.f32 1.0, %v987_v5 }
 0xe8d   :  { %1975 = vrcp.f32 %v1057_v15  ;;  %v1069_v53 = vand.u32 2147483648, %v1057_v15  ;;  %vm1063_vm5 = vweird.f32 %v1057_v15  ;;  %v1067_v14 = vand.u32 2147483647, %v1057_v15 }
 0xe8e   :  { %v989_v10 = vmul.f32 %v1972_v46, %v988_v8 }
 0xe8f   :  { %v1070_v44 = vor.u32 1.1754944e-38, %v1069_v53  ;;  %vm1068_vm8 = vcmp.eq.f32.partialorder %v1067_v14, 8.507059e+37 }
 0xe90   :  { %v990_v11 = vadd.f32 %v1972_v46, %v989_v10 }
 0xe92   :  { %v994_v41 = vsel %vm993_vm15, %v1972_v46, %v990_v11 }
 0xe93   :  { %v999_v16 = vsel %vm996_vm2, %v998_v58, %v994_v41  ;;  %v1976_v23 = vpop.eup %1975 }
 0xe94   :  { %v1059_v43 = vmul.f32 %v1976_v23, %v1057_v15  ;;  %vm1064_vm4 = vweird.f32 %v1976_v23  ;;  %v1002_v21 = vmul.f32 %v999_v16, %v2585_v50 }
 0xe95   :  { %vm1065_vm7 = vmor %vm1063_vm5, %vm1064_vm4 }
 0xe96   :  { %v1060_v28 = vsub.f32 1.0, %v1059_v43 }
 0xe98   :  { %v1061_v29 = vmul.f32 %v1976_v23, %v1060_v28 }
 0xe9a   :  { %v1062_v39 = vadd.f32 %v1976_v23, %v1061_v29 }
 0xe9c   :  { %v1066_v30 = vsel %vm1065_vm7, %v1976_v23, %v1062_v39 }
 0xe9d   :  { %v1071_v48 = vsel %vm1068_vm8, %v1070_v44, %v1066_v30 }
 0xe9e   :  { %v1074_v47 = vmul.f32 %v1071_v48, %v2595_v51 }
 0xed2   :  { %v1005_v17 = vpop.permute.xlu2 %1004 }
 0xed3   :  { %v1007_v18 = vmul.f32 %v1005_v17, %v999_v16 }
 0xed5   :  { %1009 = vrot.lane.b32.xlu1 %v1007_v18, %s2068_s18 }
 0xedd   :  { %1095 = vperm.xlu1 %1870, %v1093_v22  }
 0xef2   :  { %v1077_v45 = vpop.permute.xlu0 %1076 }
 0xef3   :  { %v1079_v31 = vmul.f32 %v1077_v45, %v1071_v48 }
 0xef5   :  { %1081 = vrot.lane.b32.xlu2 %v1079_v31, %s2068_s18 }
 0xf47   :  { %v1010_v27 = vpop.permute.xlu1 %1009 }
 0xf48   :  { %v2588_v19 = vadd.f32 %v1010_v27, %v1002_v21 }
 0xf4a   :  { %1977 = vtanh.f32 %v2588_v19 }
 0xf4f   :  { %v1082_v54 = vpop.permute.xlu2 %1081  ;;  %v2611_v24 = vpop.permute.xlu1 %1095 }
 0xf50   :  { %v1978_v56 = vpop.eup %1977  ;;  %v2598_v57 = vadd.f32 %v1082_v54, %v1074_v47  ;;  %vm1097_vm6 = vcmp.eq.s32.totalorder %v2611_v24, 1  ;;  %v1233_v54 = vsel %vm1159_vm3, 1, %v2066_v3 }
 0xf51   :  { %1015 = vrot.lane.b32.xlu0 %v1978_v56, %s2067_s17 }
 0xf52   :  { %1979 = vtanh.f32 %v2598_v57  ;;  %v2638_v56 = vsel %vm957_vm1, %v2598_v57, %v2595_v51 }
 0xf58   :  { %v1980_v32 = vpop.eup %1979 }
 0xf59   :  { %1087 = vrot.lane.b32.xlu2 %v1980_v32, %s2067_s17 }
 0xfb3   :  { %v1088_v12 = vpop.permute.xlu2 %1087 }
 0xfb4   :  { %v1090_v59 = vmul.f32 %v1088_v12, %v1071_v48 }
 0xfb6   :  { %v2606_v0 = vsel %vm957_vm1, %v1090_v59, %v2538_v61 }
 0xfb7   :  { %v1160_v42 = vpack.c.bf16 %v2606_v0, %v2606_v0 }
 0xfb9   :  { %1162 = vrot.lane.b32.xlu1 %v1160_v42, %s2068_s18  ;;  %v2645_v42 = vsel %vm1097_vm6, %v2588_v19, %v2585_v50 }
 0xfc3   :  { %v1016_v60 = vpop.permute.xlu0 %1015 }
 0xfc4   :  { %v1018_v34 = vmul.f32 %v1016_v60, %v999_v16 }
 0xfc6   :  { %v2617_v35 = vsel %vm1097_vm6, %v1018_v34, %v2549_v52 }
 0xfc7   :  { %v1101_v61 = vpack.c.bf16 %v2617_v35, %v2617_v35 }
 0xfc9   :  { %1103 = vrot.lane.b32.xlu0 %v1101_v61, %s2068_s18 }
0x102b   :  { %v1163_v36 = vpop.permute.xlu1 %1162 }
0x102c   :  { %1731 = vmatmul.msk.bf16.vlgmr.msrb.gmra.mxu0 %vm101_vm0, %v1163_v36 }
0x103b   :  { %v1104_v40 = vpop.permute.xlu0 %1103 }
0x103c   :  { %1729 = vmatmul.msk.bf16.vlgmr.msrb.gmra.mxu3 %vm101_vm0, %v1104_v40  ;;  %1732 = vmatmul.msk.bf16.vlgmr.msra.gmra.mxu1 %vm101_vm0, %v1104_v40 }
0x10a9   :  { %v1176_v37 = vpop.f32.mrf.mxu0 }
0x10b1   :  { %v1178_v6 = vpop.f32.mrf.mxu0 }
0x10b9   :  { %v1189_v33 = vpop.f32.mrf.mxu1 }
0x10ba   :  { %v1190_v62 = vadd.f32 %v1189_v33, %v1176_v37 }
0x10bc   :  { %v1193_v52 = vadd.f32 %v2567_v7, %v1190_v62 }
0x10be   :  { %1981 = vtanh.f32 %v1193_v52  ;;  %v1733_v13 = vmul.f32 -1.442695, %v1193_v52 }
0x10bf   :  { %v1117_v25 = vpop.f32.mrf.mxu3 }
0x10c0   :  { %v1121_v38 = vadd.f32 %v1117_v25, %v141_v63 }
0x10c1   :  { %v1191_v2 = vpop.f32.mrf.mxu1 }
0x10c2   :  { %1983 = vtanh.f32 %v1121_v38  ;;  %v1730_v9 = vmul.f32 -1.442695, %v1121_v38 }
0x10c4   :  { %v1982_v46 = vpop.eup %1981  ;;  %1985 = vpow2.f32 %v1730_v9 }
0x10c5   :  { %1216 = vrot.lane.b32.xlu0 %v1982_v46, %s2067_s17 }
0x10c7   :  { %v1119_v5 = vpop.f32.mrf.mxu3 }
0x10c8   :  { %v1984_v8 = vpop.eup %1983 }
0x10c9   :  { %1144 = vrot.lane.b32.xlu2 %v1984_v8, %s2067_s17 }
0x10ca   :  { %v1986_v10 = vpop.eup %1985 }
0x10cb   :  { %v1125_v11 = vadd.f32 1.0, %v1986_v10 }
0x10cd   :  { %1987 = vrcp.f32 %v1125_v11  ;;  %v1137_v16 = vand.u32 2147483648, %v1125_v11  ;;  %vm1131_vm10 = vweird.f32 %v1125_v11  ;;  %v1135_v17 = vand.u32 2147483647, %v1125_v11 }
0x10ce   :  { %1989 = vpow2.f32 %v1733_v13 }
0x10cf   :  { %v1138_v23 = vor.u32 1.1754944e-38, %v1137_v16  ;;  %vm1136_vm12 = vcmp.eq.f32.partialorder %v1135_v17, 8.507059e+37 }
0x10d3   :  { %v1988_v49 = vpop.eup %1987 }
0x10d4   :  { %v1127_v26 = vmul.f32 %v1988_v49, %v1125_v11  ;;  %v1990_v4 = vpop.eup %1989  ;;  %vm1132_vm9 = vweird.f32 %v1988_v49 }
0x10d5   :  { %v1197_v41 = vadd.f32 1.0, %v1990_v4  ;;  %vm1133_vm11 = vmor %vm1131_vm10, %vm1132_vm9 }
0x10d6   :  { %v1128_v55 = vsub.f32 1.0, %v1127_v26 }
0x10d7   :  { %1991 = vrcp.f32 %v1197_v41  ;;  %v1209_v44 = vand.u32 2147483648, %v1197_v41  ;;  %vm1203_vm14 = vweird.f32 %v1197_v41  ;;  %v1207_v45 = vand.u32 2147483647, %v1197_v41 }
0x10d8   :  { %v1129_v58 = vmul.f32 %v1988_v49, %v1128_v55 }
0x10d9   :  { %v1210_v31 = vor.u32 1.1754944e-38, %v1209_v44  ;;  %vm1208_vm2 = vcmp.eq.f32.partialorder %v1207_v45, 8.507059e+37  ;;  %v1739_v44 = vld [vmem:[%s2800_s8] sm:$0xf]  ;;  %v1841_v45 = vld [vmem:[%s2800_s8 + $0x4] sm:$0xf0] }
0x10da   :  { %v1130_v15 = vadd.f32 %v1988_v49, %v1129_v58 }
0x10dc   :  { %v1134_v18 = vsel %vm1133_vm11, %v1988_v49, %v1130_v15 }
0x10dd   :  { %v1992_v22 = vpop.eup %1991  ;;  %v1139_v43 = vsel %vm1136_vm12, %v1138_v23, %v1134_v18 }
0x10de   :  { %v1199_v39 = vmul.f32 %v1992_v22, %v1197_v41  ;;  %vm1204_vm13 = vweird.f32 %v1992_v22  ;;  %v1142_v3 = vmul.f32 %v1139_v43, %v2645_v42 }
0x10df   :  { %vm1205_vm15 = vmor %vm1203_vm14, %vm1204_vm13 }
0x10e0   :  { %v1200_v53 = vsub.f32 1.0, %v1199_v39  ;;  %v1843_v39 = vld [vmem:[%s2800_s8 + $0x14] sm:$0xf0] }
0x10e2   :  { %v1201_v14 = vmul.f32 %v1992_v22, %v1200_v53  ;;  %v1842_v53 = vld [vmem:[%s2800_s8 + $0x14] sm:$0xf] }
0x10e4   :  { %v1202_v30 = vadd.f32 %v1992_v22, %v1201_v14 }
0x10e6   :  { %v1206_v48 = vsel %vm1205_vm15, %v1992_v22, %v1202_v30  ;;  %v1749_v30 = vld [vmem:[%s2800_s8 + $0x18] sm:$0xf0] }
0x10e7   :  { %v1211_v27 = vsel %vm1208_vm2, %v1210_v31, %v1206_v48  ;;  %v1752_v48 = vor.u32 %v1842_v53, %v1749_v30  ;;  %v1840_v31 = vld [vmem:[%s2800_s8 + $0x4] sm:$0xf] }
0x10e8   :  { %v1214_v32 = vmul.f32 %v1211_v27, %v2638_v56 }
0x10e9   :  { %1398 = vmatpush.bf16.msrb.mxu1 %v1752_v48 }
0x1123   :  { %v1145_v28 = vpop.permute.xlu2 %1144 }
0x1124   :  { %v1147_v29 = vmul.f32 %v1145_v28, %v1139_v43 }
0x1126   :  { %1149 = vrot.lane.b32.xlu1 %v1147_v29, %s2068_s18  ;;  %v1747_v29 = vld [vmem:[%s2800_s8 + $0x10] sm:$0xf] }
0x1127   :  { %v1748_v14 = vor.u32 %v1843_v39, %v1747_v29 }
0x1129   :  { %1385 = vmatpush.bf16.msra.mxu0 %v1748_v14 }
0x1137   :  { %v1217_v21 = vpop.permute.xlu0 %1216 }
0x1138   :  { %v1219_v47 = vmul.f32 %v1217_v21, %v1211_v27  ;;  %v1741_v21 = vld [vmem:[%s2800_s8 + $0x8] sm:$0xf0] }
0x113a   :  { %1221 = vrot.lane.b32.xlu2 %v1219_v47, %s2068_s18  ;;  %v1744_v47 = vor.u32 %v1840_v31, %v1741_v21 }
0x113c   :  { %1399 = vmatpush.bf16.msrb.mxu1 %v1744_v47 }
0x1142   :  { %1235 = vperm.xlu2 %1871, %v1233_v54  }
0x1194   :  { %v1222_v12 = vpop.permute.xlu2 %1221 }
0x1195   :  { %v1224_v59 = vadd.f32 %v1222_v12, %v1214_v32 }
0x1197   :  { %1993 = vtanh.f32 %v1224_v59  ;;  %v1232_v16 = vsel %vm1097_vm6, %v1224_v59, %v2638_v56 }
0x1198   :  { %v1150_v20 = vpop.permute.xlu1 %1149 }
0x1199   :  { %v2648_v60 = vadd.f32 %v1150_v20, %v1142_v3  ;;  %v1851_v3 = vld [vmem:[%s2802_s10 + $0x38] sm:$0xff] }
0x119a   :  { %v1859_v20 = vld [vmem:[%s2802_s10 + $0x78] sm:$0xff]  ;;  %1541 = vmatpush.bf16.msrb.mxu2 %v1851_v3 }
0x119b   :  { %1995 = vtanh.f32 %v2648_v60  ;;  %1554 = vmatpush.bf16.msrb.mxu3 %v1859_v20 }
0x119c   :  { %v2653_v61 = vpop.permute.xlu2 %1235 }
0x119d   :  { %v1994_v1 = vpop.eup %1993  ;;  %vm1237_vm1 = vcmp.eq.s32.totalorder %v2653_v61, 1  ;;  %v1856_v61 = vld [vmem:[%s2802_s10 + $0x60] sm:$0xff] }
0x119e   :  { %1227 = vrot.lane.b32.xlu1 %v1994_v1, %s2067_s17  ;;  %v1239_v24 = vsel %vm1237_vm1, %v2648_v60, %v2645_v42  ;;  %v1850_v60 = vld [vmem:[%s2802_s10 + $0x30] sm:$0xff] }
0x119f   :  { %v1858_v1 = vld [vmem:[%s2802_s10 + $0x70] sm:$0xff]  ;;  %1542 = vmatpush.bf16.msrb.mxu2 %v1850_v60 }
0x11a0   :  { %1555 = vmatpush.bf16.msrb.mxu3 %v1858_v1 }
0x11a1   :  { %v1996_v51 = vpop.eup %1995 }
0x11a2   :  { %1155 = vrot.lane.b32.xlu0 %v1996_v51, %s2067_s17  ;;  %v1849_v51 = vld [vmem:[%s2802_s10 + $0x28] sm:$0xff] }
0x11a3   :  { %1543 = vmatpush.bf16.msrb.mxu2 %v1849_v51 }
0x1210   :  { %v1228_v57 = vpop.permute.xlu1 %1227 }
0x1211   :  { %v1230_v34 = vmul.f32 %v1228_v57, %v1211_v27  ;;  %v1740_v27 = vor.u32 %v1841_v45, %v1739_v44  ;;  %v1857_v57 = vld [vmem:[%s2802_s10 + $0x68] sm:$0xff] }
0x1212   :  { %1556 = vmatpush.bf16.msrb.mxu3 %v1857_v57 }
0x1213   :  { %v2658_v50 = vsel %vm1097_vm6, %v1230_v34, %v2606_v0  ;;  %1386 = vmatpush.bf16.msra.mxu0 %v1740_v27  ;;  %v1848_v34 = vld [vmem:[%s2802_s10 + $0x20] sm:$0xff] }
0x1214   :  { %v1156_v19 = vpop.permute.xlu0 %1155  ;;  %v1241_v36 = vpack.c.bf16 %v2658_v50, %v2658_v50  ;;  %1544 = vmatpush.bf16.msrb.mxu2 %v1848_v34 }
0x1215   :  { %v1158_v40 = vmul.f32 %v1156_v19, %v1139_v43  ;;  %v1855_v19 = vld [vmem:[%s2802_s10 + $0x58] sm:$0xff] }
0x1216   :  { %1243 = vrot.lane.b32.xlu0 %v1241_v36, %s2068_s18  ;;  %1557 = vmatpush.bf16.msrb.mxu3 %v1856_v61 }
0x1217   :  { %v1238_v37 = vsel %vm1237_vm1, %v1158_v40, %v2617_v35 }
0x1218   :  { %v1240_v6 = vpack.c.bf16 %v1238_v37, %v1238_v37 }
0x121a   :  { %1262 = vrot.lane.b32.xlu1 %v1240_v6, %s2068_s18  ;;  %1558 = vmatpush.bf16.msrb.mxu3 %v1855_v19  ;;  %v1854_v6 = vld [vmem:[%s2802_s10 + $0x50] sm:$0xff] }
0x121e   :  { %1559 = vmatpush.bf16.msrb.mxu3 %v1854_v6 }
0x1288   :  { %v1244_v33 = vpop.permute.xlu0 %1243 }
0x1289   :  { %1734 = vmatmul.msk.bf16.vlgmr.msra.gmra.mxu2 %vm101_vm0, %v1244_v33  ;;  %v1845_v33 = vld [vmem:[%s2802_s10 + $0x8] sm:$0xff] }
0x128c   :  { %v1263_v0 = vpop.permute.xlu1 %1262 }
0x128d   :  { %1735 = vmatmul.msk.bf16.vlgmr.msra.gmra.mxu3 %vm101_vm0, %v1263_v0  ;;  %v1853_v0 = vld [vmem:[%s2802_s10 + $0x48] sm:$0xff] }
0x128e   :  { %1560 = vmatpush.bf16.msrb.mxu3 %v1853_v0 }
0x130c   :  { %v1257_v62 = vpop.f32.mrf.mxu2 }
0x1310   :  { %v1276_v52 = vpop.f32.mrf.mxu3 }
0x1311   :  { %v1277_v63 = vadd.f32 %v1276_v52, %v1257_v62  ;;  %v1844_v62 = vld [vmem:[%s2802_s10] sm:$0xff] }
0x1312   :  { %v1852_v52 = vld [vmem:[%s2802_s10 + $0x40] sm:$0xff] }
0x1313   :  { %v1280_v25 = vadd.f32 %v2567_v7, %v1277_v63  ;;  %1561 = vmatpush.bf16.msrb.mxu3 %v1852_v52  ;;  %v1861_v63 = vld [vmem:[%s2804_s12 + $0x8] sm:$0xff] }
0x1314   :  { %v1259_v38 = vpop.f32.mrf.mxu2  ;;  %1598 = vmatpush.bf16.msrb.mxu0 %v1861_v63 }
0x1315   :  { %1997 = vtanh.f32 %v1280_v25  ;;  %v1736_v35 = vmul.f32 -1.442695, %v1280_v25  ;;  %v1347_v25 = vld [vmem:[%s2801_s9] sm:$0x3] }
0x1316   :  { %v1349_v38 = vperm.slane %v1347_v25, 0 }
0x1317   :  { %1999 = vpow2.f32 %v1736_v35 }
0x1318   :  { %v1278_v2 = vpop.f32.mrf.mxu3 }
0x1319   :  { %v1350_v2 = vperm.slane %v1347_v25, 1 }
0x131b   :  { %v1998_v46 = vpop.eup %1997 }
0x131c   :  { %1303 = vrot.lane.b32.xlu2 %v1998_v46, %s2067_s17 }
0x131d   :  { %v2000_v5 = vpop.eup %1999 }
0x131e   :  { %v1284_v8 = vadd.f32 1.0, %v2000_v5 }
0x1320   :  { %2001 = vrcp.f32 %v1284_v8  ;;  %v1296_v26 = vand.u32 2147483648, %v1284_v8  ;;  %vm1290_vm5 = vweird.f32 %v1284_v8  ;;  %v1294_v7 = vand.u32 2147483647, %v1284_v8 }
0x1322   :  { %v1297_v55 = vor.u32 1.1754944e-38, %v1296_v26  ;;  %vm1295_vm8 = vcmp.eq.f32.partialorder %v1294_v7, 8.507059e+37  ;;  %v1860_v7 = vld [vmem:[%s2804_s12] sm:$0xff] }
0x1323   :  { %1599 = vmatpush.bf16.msrb.mxu0 %v1860_v7 }
0x1326   :  { %v2002_v9 = vpop.eup %2001 }
0x1327   :  { %v1286_v10 = vmul.f32 %v2002_v9, %v1284_v8  ;;  %vm1291_vm4 = vweird.f32 %v2002_v9 }
0x1328   :  { %vm1292_vm7 = vmor %vm1290_vm5, %vm1291_vm4 }
0x1329   :  { %v1287_v11 = vsub.f32 1.0, %v1286_v10 }
0x132b   :  { %v1288_v13 = vmul.f32 %v2002_v9, %v1287_v11 }
0x132d   :  { %v1289_v49 = vadd.f32 %v2002_v9, %v1288_v13 }
0x132f   :  { %v1293_v4 = vsel %vm1292_vm7, %v2002_v9, %v1289_v49 }
0x1330   :  { %v1298_v58 = vsel %vm1295_vm8, %v1297_v55, %v1293_v4  ;;  %v1875_v4 = vld [vmem:[%s2803_s11] ss:$0 sm:$0xff]  ;;  %s2071_s11 = smov 128  }
0x1331   :  { %v1301_v17 = vmul.f32 %v1298_v58, %v1232_v16 }
0x1376   :  { %v1304_v41 = vpop.permute.xlu2 %1303 }
0x1377   :  { %v1306_v15 = vmul.f32 %v1304_v41, %v1298_v58 }
0x1379   :  { %1308 = vrot.lane.b32.xlu0 %v1306_v15, %s2068_s18 }
0x1381   :  { %1321 = vrot.lane.b32.xlu0 %v1238_v37, %s2068_s18  ;;  %v1846_v37 = vld [vmem:[%s2802_s10 + $0x10] sm:$0xff] }
0x13eb   :  { %v1309_v18 = vpop.permute.xlu0 %1308 }
0x13ec   :  { %v1311_v22 = vadd.f32 %v1309_v18, %v1301_v17 }
0x13ee   :  { %2003 = vtanh.f32 %v1311_v22  ;;  %v1319_v23 = vsel %vm1237_vm1, %v1311_v22, %v1232_v16 }
0x13ef   :  { %1337 = vrot.lane.b32.xlu0 %v1319_v23, %s2069_s1  ;;  %v1876_v23 = vld [vmem:[%s2805_s13] ss:$0 sm:$0xff] }
0x13f3   :  { %v1322_v43 = vpop.permute.xlu0 %1321 }
0x13f4   :  { %v2004_v28 = vpop.eup %2003  ;;  %1324 = vst.msk [vmem:[#allocation3] sm:$0xff] %vm101_vm0, %v1322_v43 }
0x13f5   :  { %1314 = vrot.lane.b32.xlu1 %v2004_v28, %s2067_s17 }
0x13fd   :  { %1326 = vrot.lane.b32.xlu1 %v1239_v24, %s2069_s1 }
0x1461   :  { %v1338_v54 = vpop.permute.xlu0 %1337 }
0x1462   :  { %1341 = vst.msk [vmem:[#allocation5 + $0x8] sm:$0xff] %vm101_vm0, %v1338_v54 }
0x1467   :  { %v1315_v56 = vpop.permute.xlu1 %1314 }
0x1468   :  { %v1317_v32 = vmul.f32 %v1315_v56, %v1298_v58 }
0x146a   :  { %v1318_v12 = vsel %vm1237_vm1, %v1317_v32, %v2658_v50  ;;  %v1847_v50 = vld [vmem:[%s2802_s10 + $0x18] sm:$0xff] }
0x146b   :  { %v1342_v59 = vpack.c.bf16 %v1318_v12, %v1318_v12  ;;  %1545 = vmatpush.bf16.msrb.mxu2 %v1847_v50 }
0x146d   :  { %1354 = vrot.lane.b32.xlu2 %v1342_v59, %s2068_s18 }
0x146f   :  { %v1327_v42 = vpop.permute.xlu1 %1326  ;;  %1546 = vmatpush.bf16.msrb.mxu2 %v1846_v37 }
0x1470   :  { %1329 = vst.msk [vmem:[#allocation5] sm:$0xff] %vm101_vm0, %v1327_v42 }
0x1471   :  { %1634 = dma.vmem_to_hbm [thread:$0]  %s1627_s30, 256, %s1629_s22, [#allocation6], %s2071_s11, %s2071_s11, %s2072_s19  }
0x1473   :  { %1547 = vmatpush.bf16.msrb.mxu2 %v1845_v33 }
0x1475   :  { %1331 = vrot.lane.b32.xlu2 %v1318_v12, %s2068_s18 }
0x1477   :  { %1548 = vmatpush.bf16.msrb.mxu2 %v1844_v62 }
0x14c7   :  { %v1355_v36 = vpop.permute.xlu2 %1354 }
0x14c8   :  { %1753 = vmatmul.msk.bf16.vlgmr.msra.gmra.mxu0 %vm101_vm0, %v1355_v36  ;;  %1754 = vmatmul.msk.bf16.vlgmr.msrb.gmra.mxu1 %vm101_vm0, %v1355_v36 }
0x14cf   :  { %v1332_v40 = vpop.permute.xlu2 %1331 }
0x14d0   :  { %1335 = vst.msk [vmem:[#allocation3 + $0x8] sm:$0xff] %vm101_vm0, %v1332_v40 }
0x14d1   :  { %1621 = dma.vmem_to_hbm [thread:$0]  %s1614_s2, 256, %s1616_s0, [#allocation4], %s2071_s11, %s2071_s11, %s2072_s19  }
0x1545   :  { %v1388_v46 = vpop.f32.mrf.mxu0  ;;  %v1401_v35 = vpop.f32.mrf.mxu1 }
0x1546   :  { %v1389_v5 = vadd.f32 %v1388_v46, %v1349_v38  ;;  %v1402_v8 = vadd.f32 %v1401_v35, %v1350_v2 }
0x1548   :  { %2005 = vtanh.f32 %v1389_v5 }
0x1549   :  { %2007 = vtanh.f32 %v1402_v8 }
0x154d   :  { %v1390_v9 = vpop.f32.mrf.mxu0  ;;  %v1403_v10 = vpop.f32.mrf.mxu1 }
0x154e   :  { %v2006_v11 = vpop.eup %2005 }
0x154f   :  { %v2008_v13 = vpop.eup %2007  ;;  %v1407_v49 = vpack.c.bf16 %v2006_v11, %v2006_v11 }
0x1550   :  { %v1408_v26 = vpack.c.bf16 %v2008_v13, %v2008_v13 }
0x1551   :  { %1549 = vmatmul.bf16.vlgmr.msrb.gmra.mxu2 %v1407_v49 }
0x1552   :  { %1562 = vmatmul.bf16.vlgmr.msrb.gmra.mxu3 %v1408_v26 }
0x15d4   :  { %v1550_v55 = vpop.f32.mrf.mxu2 }
0x15d5   :  { %v1551_v41 = vadd.f32 %v1875_v4, %v1550_v55  ;;  %v1563_v58 = vpop.f32.mrf.mxu3 }
0x15d7   :  { %v1564_v15 = vadd.f32 %v1563_v58, %v1551_v41 }
0x15d9   :  { %2009 = vtanh.f32 %v1564_v15 }
0x15dc   :  { %v1552_v16 = vpop.f32.mrf.mxu2 }
0x15dd   :  { %v1565_v17 = vpop.f32.mrf.mxu3 }
0x15df   :  { %v2010_v18 = vpop.eup %2009 }
0x15e0   :  { %v1568_v22 = vpack.c.bf16 %v2010_v18, %v2010_v18 }
0x15e2   :  { %1827 = vmatmul.msk.bf16.vlgmr.msrb.gmra.mxu0 %vm101_vm0, %v1568_v22  ;;  %vm1605_vm0 = vcmask 15360  }
0x165f   :  { %v1601_v43 = vpop.f32.mrf.mxu0 }
0x1660   :  { %v1602_v28 = vadd.f32 %v1876_v23, %v1601_v43 }
0x1662   :  { %1606 = vst.msk [vmem:[%s2806_s14] sm:$0xff] %vm1605_vm0, %v1602_v28 }
0x1667   :  { %v1603_v24 = vpop.f32.mrf.mxu0 }
0x1668   :  { %2062 = dma.done.wait [#allocation4], 256  }
0x1669   :  { %2063 = vsyncadd [#allocation4], 4294967040 }
0x166a   :  { %2064 = dma.done.wait [#allocation6], 256  }
0x166b   :  { %2065 = vsyncadd [#allocation6], 4294967040 }
0x166c   :  { %1645 = vsyncpa [#allocation4], 1 }
0x166d   :  { %1646 = vsyncpa [#allocation6], 1 }

</bundles_post_ra>
